<compile_context>
chip_gen: v7x
topology: tpu7x:2x2x1
jax: 0.10.0
libtpu: 0.0.40
codegen_flags: <defaults>
</compile_context>

<pallas_src>
import jax
import jax.numpy as jnp
from jax.experimental import pallas as pl
from jax.experimental.pallas import tpu as pltpu

GROUPS = 16  # nn.GroupNorm(16, dim)


def _softplus(w):
    # PyTorch nn.Softplus default (beta=1, threshold=20)
    return jnp.where(w > 20.0, w, jnp.log1p(jnp.exp(jnp.minimum(w, 20.0))))


# ----------------------------------------------------------------------------
# Kernel factory
# ----------------------------------------------------------------------------
def _make_kernel(dim, n_mats, L, n_iters):
    cpg = dim // GROUPS
    inv_n = 1.0 / float(cpg * L)
    f32 = jnp.float32

    def kernel(x_ref, mat_ref, w_ref, ln_ref, p_ref,      # per-batch / constant
               wl_ref, wc_ref, aux_ref,                     # streamed per iteration
               out_ref,
               xs, mt_sc, cs_sc):                           # VMEM scratch
        i = pl.program_id(1)

        # ---- once per batch element: mat transform + column sums + x load ---
        @pl.when(i == 0)
        def _init():
            cs_rows = []
            for n in range(n_mats):
                w = w_ref[n]                                           # (L, L)
                sp = jnp.where(w > 20.0, w,
                               jnp.log(1.0 + jnp.exp(jnp.minimum(w, 20.0))))
                m_n = jnp.exp(sp * (mat_ref[0, n] + ln_ref[n]))        # (L, L)
                mt_sc[n] = m_n
                cs_rows.append(jnp.sum(m_n, axis=0, keepdims=True))    # 1^T M_n
            cs_sc[...] = jnp.concatenate(cs_rows, axis=0)              # (n_mats, L)
            xs[...] = x_ref[0].astype(f32)

        P = p_ref[...]                                     # (dim, dim) same-group
        aux = aux_ref[0]                                   # (dim, n_mats + 9)

        def vec(k):                                        # k-th packed (dim,1) vector
            c = n_mats + k
            return aux[:, c:c + 1]

        def group_norm(y, gamma, beta):
            # Two-pass (numerically stable) GroupNorm over (cpg channels x L).
            s1 = jnp.sum(y, axis=-1, keepdims=True)                      # (dim,1)
            mean = jnp.dot(P, s1, preferred_element_type=f32) * inv_n    # group mean / channel
            d = y - mean
            s2 = jnp.sum(d * d, axis=-1, keepdims=True)
            var = jnp.dot(P, s2, preferred_element_type=f32) * inv_n
            return d * (gamma * jax.lax.rsqrt(var + 1e-5)) + beta

        x = xs[...]                                        # (dim, L)

        # z = sum_n W_n (x M_n) + Bl @ (1^T M)   -- no sublane concatenate.
        bl = aux[:, 0:n_mats]                              # (dim, n_mats)
        z = jnp.dot(bl, cs_sc[...], preferred_element_type=f32)
        for n in range(n_mats):
            xm = jnp.dot(x, mt_sc[n], preferred_element_type=f32)       # (dim, L)
            z = z + jnp.dot(wl_ref[0, n * dim:(n + 1) * dim, :], xm,
                            preferred_element_type=f32)

        # lm: Conv1d(dim, dim, 1) + GroupNorm(16, dim)
        t = jnp.dot(wc_ref[0, 0:dim, :], x + z,
                    preferred_element_type=f32) + vec(0)
        t = group_norm(t, vec(1), vec(2))

        # m: (Conv1d + GN + ReLU) x 2, then residual add
        u = jnp.dot(wc_ref[0, dim:2 * dim, :], t,
                    preferred_element_type=f32) + vec(3)
        u = jnp.maximum(group_norm(u, vec(4), vec(5)), 0.0)
        u = jnp.dot(wc_ref[0, 2 * dim:3 * dim, :], u,
                    preferred_element_type=f32) + vec(6)
        u = jnp.maximum(group_norm(u, vec(7), vec(8)), 0.0)

        new_x = t + u
        xs[...] = new_x

        @pl.when(i == n_iters - 1)
        def _store():
            out_ref[0] = new_x.astype(out_ref.dtype)

    return kernel


# ----------------------------------------------------------------------------
# One-time parameter packing (outside the per-call hot path)
# ----------------------------------------------------------------------------
def prepare_params(params, dim, n_mats, L):
    its = params["iters"]
    # Big linear weights, stacked per iteration (streamed into the kernel).
    wl = jnp.stack([it["wl"] for it in its])                              # (I, n_mats*dim, dim)
    # lm / m1 / m2 conv weights, stacked per iteration as one (3*dim, dim) slab.
    wc = jnp.stack([jnp.concatenate([it["wlm"], it["wm1"], it["wm2"]], axis=0)
                    for it in its])                                       # (I, 3*dim, dim)
    # All per-iteration (dim,1) vectors packed into one slab per iteration:
    # columns [bl (n_mats) | blm glm betlm | bm1 gm1 bem1 | bm2 gm2 bem2].
    aux = jnp.stack([jnp.concatenate(
        [it["bl"].reshape(n_mats, dim).T,
         it["blm"], it["glm"], it["betlm"],
         it["bm1"], it["gm1"], it["bem1"],
         it["bm2"], it["gm2"], it["bem2"]], axis=1) for it in its])       # (I, dim, n_mats+9)
    # Mix weight, broadcast to the mat shape (softplus/exp happen in-kernel).
    w_b = jnp.broadcast_to(params["weight"].reshape(n_mats, 1, 1),
                           (n_mats, L, L)).astype(jnp.float32)
    # Same-group indicator for the GroupNorm channel->group reduction.
    grp = jnp.arange(dim) // (dim // GROUPS)
    P = (grp[:, None] == grp[None, :]).astype(jnp.float32)
    return {"wl": wl, "wc": wc, "aux": aux, "w_b": w_b,
            "lognorm": params["lognormmat"].astype(jnp.float32), "P": P}


# ----------------------------------------------------------------------------
# Forward: single pallas_call, grid = (B, n_iters)
# ----------------------------------------------------------------------------
def multiplicative_ff(x, mat, prep):
    B, dim, L = x.shape
    n_mats = mat.shape[1]
    wl, wc, aux = prep["wl"], prep["wc"], prep["aux"]
    n_iters = wl.shape[0]
    naux = aux.shape[-1]

    kernel = _make_kernel(dim, n_mats, L, n_iters)

    in_specs = [
        pl.BlockSpec((1, dim, L), lambda b, i: (b, 0, 0)),             # x
        pl.BlockSpec((1, n_mats, L, L), lambda b, i: (b, 0, 0, 0)),    # raw mat
        pl.BlockSpec((n_mats, L, L), lambda b, i: (0, 0, 0)),          # weight (broadcast)
        pl.BlockSpec((n_mats, L, L), lambda b, i: (0, 0, 0)),          # lognormmat
        pl.BlockSpec((dim, dim), lambda b, i: (0, 0)),                 # P (same-group)
        pl.BlockSpec((1, n_mats * dim, dim), lambda b, i: (i, 0, 0)),  # wl (streamed)
        pl.BlockSpec((1, 3 * dim, dim), lambda b, i: (i, 0, 0)),       # wc (streamed)
        pl.BlockSpec((1, dim, naux), lambda b, i: (i, 0, 0)),          # aux (streamed)
    ]
    out_spec = pl.BlockSpec((1, dim, L), lambda b, i: (b, 0, 0))

    return pl.pallas_call(
        kernel,
        out_shape=jax.ShapeDtypeStruct((B, dim, L), jnp.float32),
        grid=(B, n_iters),
        in_specs=in_specs,
        out_specs=out_spec,
        scratch_shapes=[
            pltpu.VMEM((dim, L), jnp.float32),          # activation (resident across iters)
            pltpu.VMEM((n_mats, L, L), jnp.float32),    # transformed mats
            pltpu.VMEM((n_mats, L), jnp.float32),       # column sums
        ],
        compiler_params=pltpu.CompilerParams(
            dimension_semantics=("parallel", "arbitrary"),
        ),
    )(x, mat, prep["w_b"], prep["lognorm"], prep["P"], wl, wc, aux)


# ----------------------------------------------------------------------------
# Pure-JAX reference mirroring the PyTorch forward (correctness check)
# ----------------------------------------------------------------------------
def reference(x, mat, params):
    sp = _softplus(params["weight"])
    m = jnp.exp(sp[None, :, None, None] * (mat + params["lognormmat"][None]))
    B, dim, L = x.shape
    n_mats = mat.shape[1]

    def conv1x1(v, w, b):               # v: (B, Cin, L), w: (Cout, Cin), b: (Cout, 1)
        return jnp.einsum("oc,bcl->bol", w, v) + b[None]

    def gn(v, gamma, beta, eps=1e-5):
        Bv, C, Lv = v.shape
        vr = v.reshape(Bv, GROUPS, (C // GROUPS) * Lv)
        mean = vr.mean(axis=-1, keepdims=True)
        var = ((vr - mean) ** 2).mean(axis=-1, keepdims=True)
        vn = ((vr - mean) / jnp.sqrt(var + eps)).reshape(Bv, C, Lv)
        return vn * gamma[None] + beta[None]

    for it in params["iters"]:
        y = conv1x1(x, it["wl"], it["bl"]).reshape(B, n_mats, dim, L)
        z = jnp.einsum("bndl,bnlm->bndm", y, m).sum(axis=1)
        t = gn(conv1x1(x + z, it["wlm"], it["blm"]), it["glm"], it["betlm"])
        u = jax.nn.relu(gn(conv1x1(t, it["wm1"], it["bm1"]), it["gm1"], it["bem1"]))
        u = jax.nn.relu(gn(conv1x1(u, it["wm2"], it["bm2"]), it["gm2"], it["bem2"]))
        x = t + u
    return x


# ----------------------------------------------------------------------------
# Deterministic parameter initialization (synthetic, not a checkpoint load)
# ----------------------------------------------------------------------------
def init_params(key, dim, n_mats, L):
    k_log, key = jax.random.split(key)
    params = {
        "weight": jnp.ones((n_mats,), jnp.float32),     # nn.Parameter(torch.ones(n_mats))
        "lognormmat": 0.1 * jax.random.normal(k_log, (n_mats, L, L), jnp.float32),
        "iters": [],
    }
    for _ in range(6):
        key, *ks = jax.random.split(key, 15)
        it = {
            "wl":   0.05 * jax.random.normal(ks[0], (n_mats * dim, dim), jnp.float32),
            "bl":   0.05 * jax.random.normal(ks[1], (n_mats * dim, 1), jnp.float32),
            "wlm":  0.05 * jax.random.normal(ks[2], (dim, dim), jnp.float32),
            "blm":  0.05 * jax.random.normal(ks[3], (dim, 1), jnp.float32),
            "glm":  1.0 + 0.1 * jax.random.normal(ks[4], (dim, 1), jnp.float32),
            "betlm": 0.1 * jax.random.normal(ks[5], (dim, 1), jnp.float32),
            "wm1":  0.05 * jax.random.normal(ks[6], (dim, dim), jnp.float32),
            "bm1":  0.05 * jax.random.normal(ks[7], (dim, 1), jnp.float32),
            "gm1":  1.0 + 0.1 * jax.random.normal(ks[8], (dim, 1), jnp.float32),
            "bem1": 0.1 * jax.random.normal(ks[9], (dim, 1), jnp.float32),
            "wm2":  0.05 * jax.random.normal(ks[10], (dim, dim), jnp.float32),
            "bm2":  0.05 * jax.random.normal(ks[11], (dim, 1), jnp.float32),
            "gm2":  1.0 + 0.1 * jax.random.normal(ks[12], (dim, 1), jnp.float32),
            "bem2": 0.1 * jax.random.normal(ks[13], (dim, 1), jnp.float32),
        }
        params["iters"].append(it)
    return params


if __name__ == "__main__":
    B, dim, n_mats, L = 2, 32, 4, 16    # dim must be a multiple of 16 (GroupNorm(16, dim))
    key = jax.random.PRNGKey(0)
    kx, kmat, kp = jax.random.split(key, 3)
    x = jax.random.normal(kx, (B, dim, L), jnp.float32)
    mat = 0.1 * jax.random.normal(kmat, (B, n_mats, L, L), jnp.float32)
    params = init_params(kp, dim, n_mats, L)

    # Weight stacking/permutation done once, outside the per-call hot path.
    prep = prepare_params(params, dim, n_mats, L)

    fwd = jax.jit(multiplicative_ff)
    out = jax.block_until_ready(fwd(x, mat, prep))
    ref = jax.block_until_ready(jax.jit(reference)(x, mat, params))

    assert out.shape == (B, dim, L)
    max_err = float(jnp.max(jnp.abs(out - ref)))
    assert jnp.allclose(out, ref, atol=2e-3, rtol=2e-3), f"max abs err {max_err}"
    print("KERNEL_OK")
</pallas_src>

<mosaic_0001>
module attributes {stable_mosaic.version = 11 : i64} {
  func.func @kernel(%arg0: i32, %arg1: i32, %arg2: memref<1x32x16xf32, #tpu.memory_space<vmem>>, %arg3: memref<1x4x16x16xf32, #tpu.memory_space<vmem>>, %arg4: memref<4x16x16xf32, #tpu.memory_space<vmem>>, %arg5: memref<4x16x16xf32, #tpu.memory_space<vmem>>, %arg6: memref<32x32xf32, #tpu.memory_space<vmem>>, %arg7: memref<1x128x32xf32, #tpu.memory_space<vmem>>, %arg8: memref<1x96x32xf32, #tpu.memory_space<vmem>>, %arg9: memref<1x32x13xf32, #tpu.memory_space<vmem>>, %arg10: memref<1x32x16xf32, #tpu.memory_space<vmem>>, %arg11: memref<32x16xf32, #tpu.memory_space<vmem>>, %arg12: memref<4x16x16xf32, #tpu.memory_space<vmem>>, %arg13: memref<4x16xf32, #tpu.memory_space<vmem>>) attributes {dimension_semantics = [#tpu.dimension_semantics<parallel>, #tpu.dimension_semantics<arbitrary>], iteration_bounds = array<i64: 2, 6>, scalar_prefetch = 0 : i64, scratch_operands = 3 : i64, tpu.core_type = #tpu.core_type<tc>, window_params = [{transform_indices = @transform_0, window_bounds = array<i64: 1, 32, 16>}, {transform_indices = @transform_1, window_bounds = array<i64: 1, 4, 16, 16>}, {pipeline_mode = #tpu.pipeline_mode<synchronous>, transform_indices = @transform_2, window_bounds = array<i64: 4, 16, 16>}, {pipeline_mode = #tpu.pipeline_mode<synchronous>, transform_indices = @transform_3, window_bounds = array<i64: 4, 16, 16>}, {pipeline_mode = #tpu.pipeline_mode<synchronous>, transform_indices = @transform_4, window_bounds = array<i64: 32, 32>}, {transform_indices = @transform_5, window_bounds = array<i64: 1, 128, 32>}, {transform_indices = @transform_6, window_bounds = array<i64: 1, 96, 32>}, {transform_indices = @transform_7, window_bounds = array<i64: 1, 32, 13>}, {transform_indices = @transform_8, window_bounds = array<i64: 1, 32, 16>}]} {
    %c0_i32 = arith.constant 0 : i32
    %0 = arith.cmpi eq, %arg1, %c0_i32 : i32
    %1 = arith.extui %0 : i1 to i32
    %c0_i32_0 = arith.constant 0 : i32
    %2 = arith.cmpi ne, %1, %c0_i32_0 : i32
    scf.if %2 {
      %c0_73 = arith.constant 0 : index
      %c0_74 = arith.constant 0 : index
      %c0_75 = arith.constant 0 : index
      %135 = vector.load %arg4[%c0_73, %c0_74, %c0_75] : memref<4x16x16xf32, #tpu.memory_space<vmem>>, vector<1x16x16xf32>
      %136 = vector.shape_cast %135 : vector<1x16x16xf32> to vector<16x16xf32>
      %cst_76 = arith.constant 2.000000e+01 : f32
      %137 = vector.broadcast %cst_76 : f32 to vector<16x16xf32>
      %138 = arith.cmpf ogt, %136, %137 : vector<16x16xf32>
      %cst_77 = arith.constant 2.000000e+01 : f32
      %139 = vector.broadcast %cst_77 : f32 to vector<16x16xf32>
      %140 = arith.minimumf %136, %139 : vector<16x16xf32>
      %141 = math.exp %140 : vector<16x16xf32>
      %cst_78 = arith.constant 1.000000e+00 : f32
      %142 = vector.broadcast %cst_78 : f32 to vector<16x16xf32>
      %143 = arith.addf %142, %141 : vector<16x16xf32>
      %144 = math.log %143 : vector<16x16xf32>
      %145 = arith.select %138, %136, %144 : vector<16x16xi1>, vector<16x16xf32>
      %c0_79 = arith.constant 0 : index
      %c0_80 = arith.constant 0 : index
      %c0_81 = arith.constant 0 : index
      %c0_82 = arith.constant 0 : index
      %146 = vector.load %arg3[%c0_79, %c0_80, %c0_81, %c0_82] : memref<1x4x16x16xf32, #tpu.memory_space<vmem>>, vector<1x1x16x16xf32>
      %147 = vector.shape_cast %146 : vector<1x1x16x16xf32> to vector<16x16xf32>
      %c0_83 = arith.constant 0 : index
      %c0_84 = arith.constant 0 : index
      %c0_85 = arith.constant 0 : index
      %148 = vector.load %arg5[%c0_83, %c0_84, %c0_85] : memref<4x16x16xf32, #tpu.memory_space<vmem>>, vector<1x16x16xf32>
      %149 = vector.shape_cast %148 : vector<1x16x16xf32> to vector<16x16xf32>
      %150 = arith.addf %147, %149 : vector<16x16xf32>
      %151 = arith.mulf %145, %150 : vector<16x16xf32>
      %152 = math.exp %151 : vector<16x16xf32>
      %c0_86 = arith.constant 0 : index
      %c0_87 = arith.constant 0 : index
      %c0_88 = arith.constant 0 : index
      %153 = vector.load %arg12[%c0_86, %c0_87, %c0_88] : memref<4x16x16xf32, #tpu.memory_space<vmem>>, vector<1x16x16xf32>
      %154 = vector.shape_cast %153 : vector<1x16x16xf32> to vector<16x16xf32>
      %155 = vector.shape_cast %152 : vector<16x16xf32> to vector<1x16x16xf32>
      tpu.vector_store %arg12[%c0_86, %c0_87, %c0_88], %155 {strides = array<i32>} : memref<4x16x16xf32, #tpu.memory_space<vmem>>, vector<1x16x16xf32>,
      %cst_89 = arith.constant dense<0.000000e+00> : vector<16xf32>
      %156 = vector.multi_reduction <add>, %152, %cst_89 [0] : vector<16x16xf32> to vector<16xf32>
      %157 = vector.shape_cast %156 : vector<16xf32> to vector<1x16xf32>
      %c1_90 = arith.constant 1 : index
      %c0_91 = arith.constant 0 : index
      %c0_92 = arith.constant 0 : index
      %158 = vector.load %arg4[%c1_90, %c0_91, %c0_92] : memref<4x16x16xf32, #tpu.memory_space<vmem>>, vector<1x16x16xf32>
      %159 = vector.shape_cast %158 : vector<1x16x16xf32> to vector<16x16xf32>
      %cst_93 = arith.constant 2.000000e+01 : f32
      %160 = vector.broadcast %cst_93 : f32 to vector<16x16xf32>
      %161 = arith.cmpf ogt, %159, %160 : vector<16x16xf32>
      %cst_94 = arith.constant 2.000000e+01 : f32
      %162 = vector.broadcast %cst_94 : f32 to vector<16x16xf32>
      %163 = arith.minimumf %159, %162 : vector<16x16xf32>
      %164 = math.exp %163 : vector<16x16xf32>
      %cst_95 = arith.constant 1.000000e+00 : f32
      %165 = vector.broadcast %cst_95 : f32 to vector<16x16xf32>
      %166 = arith.addf %165, %164 : vector<16x16xf32>
      %167 = math.log %166 : vector<16x16xf32>
      %168 = arith.select %161, %159, %167 : vector<16x16xi1>, vector<16x16xf32>
      %c0_96 = arith.constant 0 : index
      %c1_97 = arith.constant 1 : index
      %c0_98 = arith.constant 0 : index
      %c0_99 = arith.constant 0 : index
      %169 = vector.load %arg3[%c0_96, %c1_97, %c0_98, %c0_99] : memref<1x4x16x16xf32, #tpu.memory_space<vmem>>, vector<1x1x16x16xf32>
      %170 = vector.shape_cast %169 : vector<1x1x16x16xf32> to vector<16x16xf32>
      %c1_100 = arith.constant 1 : index
      %c0_101 = arith.constant 0 : index
      %c0_102 = arith.constant 0 : index
      %171 = vector.load %arg5[%c1_100, %c0_101, %c0_102] : memref<4x16x16xf32, #tpu.memory_space<vmem>>, vector<1x16x16xf32>
      %172 = vector.shape_cast %171 : vector<1x16x16xf32> to vector<16x16xf32>
      %173 = arith.addf %170, %172 : vector<16x16xf32>
      %174 = arith.mulf %168, %173 : vector<16x16xf32>
      %175 = math.exp %174 : vector<16x16xf32>
      %c1_103 = arith.constant 1 : index
      %c0_104 = arith.constant 0 : index
      %c0_105 = arith.constant 0 : index
      %176 = vector.load %arg12[%c1_103, %c0_104, %c0_105] : memref<4x16x16xf32, #tpu.memory_space<vmem>>, vector<1x16x16xf32>
      %177 = vector.shape_cast %176 : vector<1x16x16xf32> to vector<16x16xf32>
      %178 = vector.shape_cast %175 : vector<16x16xf32> to vector<1x16x16xf32>
      tpu.vector_store %arg12[%c1_103, %c0_104, %c0_105], %178 {strides = array<i32>} : memref<4x16x16xf32, #tpu.memory_space<vmem>>, vector<1x16x16xf32>,
      %cst_106 = arith.constant dense<0.000000e+00> : vector<16xf32>
      %179 = vector.multi_reduction <add>, %175, %cst_106 [0] : vector<16x16xf32> to vector<16xf32>
      %180 = vector.shape_cast %179 : vector<16xf32> to vector<1x16xf32>
      %c2_107 = arith.constant 2 : index
      %c0_108 = arith.constant 0 : index
      %c0_109 = arith.constant 0 : index
      %181 = vector.load %arg4[%c2_107, %c0_108, %c0_109] : memref<4x16x16xf32, #tpu.memory_space<vmem>>, vector<1x16x16xf32>
      %182 = vector.shape_cast %181 : vector<1x16x16xf32> to vector<16x16xf32>
      %cst_110 = arith.constant 2.000000e+01 : f32
      %183 = vector.broadcast %cst_110 : f32 to vector<16x16xf32>
      %184 = arith.cmpf ogt, %182, %183 : vector<16x16xf32>
      %cst_111 = arith.constant 2.000000e+01 : f32
      %185 = vector.broadcast %cst_111 : f32 to vector<16x16xf32>
      %186 = arith.minimumf %182, %185 : vector<16x16xf32>
      %187 = math.exp %186 : vector<16x16xf32>
      %cst_112 = arith.constant 1.000000e+00 : f32
      %188 = vector.broadcast %cst_112 : f32 to vector<16x16xf32>
      %189 = arith.addf %188, %187 : vector<16x16xf32>
      %190 = math.log %189 : vector<16x16xf32>
      %191 = arith.select %184, %182, %190 : vector<16x16xi1>, vector<16x16xf32>
      %c0_113 = arith.constant 0 : index
      %c2_114 = arith.constant 2 : index
      %c0_115 = arith.constant 0 : index
      %c0_116 = arith.constant 0 : index
      %192 = vector.load %arg3[%c0_113, %c2_114, %c0_115, %c0_116] : memref<1x4x16x16xf32, #tpu.memory_space<vmem>>, vector<1x1x16x16xf32>
      %193 = vector.shape_cast %192 : vector<1x1x16x16xf32> to vector<16x16xf32>
      %c2_117 = arith.constant 2 : index
      %c0_118 = arith.constant 0 : index
      %c0_119 = arith.constant 0 : index
      %194 = vector.load %arg5[%c2_117, %c0_118, %c0_119] : memref<4x16x16xf32, #tpu.memory_space<vmem>>, vector<1x16x16xf32>
      %195 = vector.shape_cast %194 : vector<1x16x16xf32> to vector<16x16xf32>
      %196 = arith.addf %193, %195 : vector<16x16xf32>
      %197 = arith.mulf %191, %196 : vector<16x16xf32>
      %198 = math.exp %197 : vector<16x16xf32>
      %c2_120 = arith.constant 2 : index
      %c0_121 = arith.constant 0 : index
      %c0_122 = arith.constant 0 : index
      %199 = vector.load %arg12[%c2_120, %c0_121, %c0_122] : memref<4x16x16xf32, #tpu.memory_space<vmem>>, vector<1x16x16xf32>
      %200 = vector.shape_cast %199 : vector<1x16x16xf32> to vector<16x16xf32>
      %201 = vector.shape_cast %198 : vector<16x16xf32> to vector<1x16x16xf32>
      tpu.vector_store %arg12[%c2_120, %c0_121, %c0_122], %201 {strides = array<i32>} : memref<4x16x16xf32, #tpu.memory_space<vmem>>, vector<1x16x16xf32>,
      %cst_123 = arith.constant dense<0.000000e+00> : vector<16xf32>
      %202 = vector.multi_reduction <add>, %198, %cst_123 [0] : vector<16x16xf32> to vector<16xf32>
      %203 = vector.shape_cast %202 : vector<16xf32> to vector<1x16xf32>
      %c3_124 = arith.constant 3 : index
      %c0_125 = arith.constant 0 : index
      %c0_126 = arith.constant 0 : index
      %204 = vector.load %arg4[%c3_124, %c0_125, %c0_126] : memref<4x16x16xf32, #tpu.memory_space<vmem>>, vector<1x16x16xf32>
      %205 = vector.shape_cast %204 : vector<1x16x16xf32> to vector<16x16xf32>
      %cst_127 = arith.constant 2.000000e+01 : f32
      %206 = vector.broadcast %cst_127 : f32 to vector<16x16xf32>
      %207 = arith.cmpf ogt, %205, %206 : vector<16x16xf32>
      %cst_128 = arith.constant 2.000000e+01 : f32
      %208 = vector.broadcast %cst_128 : f32 to vector<16x16xf32>
      %209 = arith.minimumf %205, %208 : vector<16x16xf32>
      %210 = math.exp %209 : vector<16x16xf32>
      %cst_129 = arith.constant 1.000000e+00 : f32
      %211 = vector.broadcast %cst_129 : f32 to vector<16x16xf32>
      %212 = arith.addf %211, %210 : vector<16x16xf32>
      %213 = math.log %212 : vector<16x16xf32>
      %214 = arith.select %207, %205, %213 : vector<16x16xi1>, vector<16x16xf32>
      %c0_130 = arith.constant 0 : index
      %c3_131 = arith.constant 3 : index
      %c0_132 = arith.constant 0 : index
      %c0_133 = arith.constant 0 : index
      %215 = vector.load %arg3[%c0_130, %c3_131, %c0_132, %c0_133] : memref<1x4x16x16xf32, #tpu.memory_space<vmem>>, vector<1x1x16x16xf32>
      %216 = vector.shape_cast %215 : vector<1x1x16x16xf32> to vector<16x16xf32>
      %c3_134 = arith.constant 3 : index
      %c0_135 = arith.constant 0 : index
      %c0_136 = arith.constant 0 : index
      %217 = vector.load %arg5[%c3_134, %c0_135, %c0_136] : memref<4x16x16xf32, #tpu.memory_space<vmem>>, vector<1x16x16xf32>
      %218 = vector.shape_cast %217 : vector<1x16x16xf32> to vector<16x16xf32>
      %219 = arith.addf %216, %218 : vector<16x16xf32>
      %220 = arith.mulf %214, %219 : vector<16x16xf32>
      %221 = math.exp %220 : vector<16x16xf32>
      %c3_137 = arith.constant 3 : index
      %c0_138 = arith.constant 0 : index
      %c0_139 = arith.constant 0 : index
      %222 = vector.load %arg12[%c3_137, %c0_138, %c0_139] : memref<4x16x16xf32, #tpu.memory_space<vmem>>, vector<1x16x16xf32>
      %223 = vector.shape_cast %222 : vector<1x16x16xf32> to vector<16x16xf32>
      %224 = vector.shape_cast %221 : vector<16x16xf32> to vector<1x16x16xf32>
      tpu.vector_store %arg12[%c3_137, %c0_138, %c0_139], %224 {strides = array<i32>} : memref<4x16x16xf32, #tpu.memory_space<vmem>>, vector<1x16x16xf32>,
      %cst_140 = arith.constant dense<0.000000e+00> : vector<16xf32>
      %225 = vector.multi_reduction <add>, %221, %cst_140 [0] : vector<16x16xf32> to vector<16xf32>
      %226 = vector.shape_cast %225 : vector<16xf32> to vector<1x16xf32>
      %227 = tpu.concatenate %157, %180, %203, %226 in 0 : vector<1x16xf32>, vector<1x16xf32>, vector<1x16xf32>, vector<1x16xf32> -> vector<4x16xf32>
      %c0_141 = arith.constant 0 : index
      %c0_142 = arith.constant 0 : index
      %228 = vector.load %arg13[%c0_141, %c0_142] : memref<4x16xf32, #tpu.memory_space<vmem>>, vector<4x16xf32>
      tpu.vector_store %arg13[%c0_141, %c0_142], %227 {strides = array<i32>} : memref<4x16xf32, #tpu.memory_space<vmem>>, vector<4x16xf32>,
      %c0_143 = arith.constant 0 : index
      %c0_144 = arith.constant 0 : index
      %c0_145 = arith.constant 0 : index
      %229 = vector.load %arg2[%c0_143, %c0_144, %c0_145] : memref<1x32x16xf32, #tpu.memory_space<vmem>>, vector<1x32x16xf32>
      %230 = vector.shape_cast %229 : vector<1x32x16xf32> to vector<32x16xf32>
      %c0_146 = arith.constant 0 : index
      %c0_147 = arith.constant 0 : index
      %231 = vector.load %arg11[%c0_146, %c0_147] : memref<32x16xf32, #tpu.memory_space<vmem>>, vector<32x16xf32>
      tpu.vector_store %arg11[%c0_146, %c0_147], %230 {strides = array<i32>} : memref<32x16xf32, #tpu.memory_space<vmem>>, vector<32x16xf32>,
    } else {
    }
    %c0 = arith.constant 0 : index
    %c0_1 = arith.constant 0 : index
    %3 = vector.load %arg6[%c0, %c0_1] : memref<32x32xf32, #tpu.memory_space<vmem>>, vector<32x32xf32>
    %c0_2 = arith.constant 0 : index
    %c0_3 = arith.constant 0 : index
    %c0_4 = arith.constant 0 : index
    %4 = vector.load %arg9[%c0_2, %c0_3, %c0_4] : memref<1x32x13xf32, #tpu.memory_space<vmem>>, vector<1x32x13xf32>
    %5 = vector.shape_cast %4 : vector<1x32x13xf32> to vector<32x13xf32>
    %c0_5 = arith.constant 0 : index
    %c0_6 = arith.constant 0 : index
    %6 = vector.load %arg11[%c0_5, %c0_6] : memref<32x16xf32, #tpu.memory_space<vmem>>, vector<32x16xf32>
    %7 = vector.extract_strided_slice %5 {offsets = [0, 0], sizes = [32, 4], strides = [1, 1]} : vector<32x13xf32> to vector<32x4xf32>
    %c0_7 = arith.constant 0 : index
    %c0_8 = arith.constant 0 : index
    %8 = vector.load %arg13[%c0_7, %c0_8] : memref<4x16xf32, #tpu.memory_space<vmem>>, vector<4x16xf32>
    %cst = arith.constant dense<0.000000e+00> : vector<32x16xf32>
    %9 = tpu.matmul %7, %8, %cst {dimension_numbers = #tpu.dot_dimension_numbers<[1], [0], [0], [1], [0, 0, 1, 1], [], []>} : vector<32x4xf32>, vector<4x16xf32>, vector<32x16xf32> -> vector<32x16xf32>
    %c0_9 = arith.constant 0 : index
    %c0_10 = arith.constant 0 : index
    %c0_11 = arith.constant 0 : index
    %10 = vector.load %arg12[%c0_9, %c0_10, %c0_11] : memref<4x16x16xf32, #tpu.memory_space<vmem>>, vector<1x16x16xf32>
    %11 = vector.shape_cast %10 : vector<1x16x16xf32> to vector<16x16xf32>
    %cst_12 = arith.constant dense<0.000000e+00> : vector<32x16xf32>
    %12 = tpu.matmul %6, %11, %cst_12 {dimension_numbers = #tpu.dot_dimension_numbers<[1], [0], [0], [1], [0, 0, 1, 1], [], []>} : vector<32x16xf32>, vector<16x16xf32>, vector<32x16xf32> -> vector<32x16xf32>
    %c0_13 = arith.constant 0 : index
    %c0_14 = arith.constant 0 : index
    %c0_15 = arith.constant 0 : index
    %13 = vector.load %arg7[%c0_13, %c0_14, %c0_15] : memref<1x128x32xf32, #tpu.memory_space<vmem>>, vector<1x32x32xf32>
    %14 = vector.shape_cast %13 : vector<1x32x32xf32> to vector<32x32xf32>
    %cst_16 = arith.constant dense<0.000000e+00> : vector<32x16xf32>
    %15 = tpu.matmul %14, %12, %cst_16 {dimension_numbers = #tpu.dot_dimension_numbers<[1], [0], [0], [1], [0, 0, 1, 1], [], []>} : vector<32x32xf32>, vector<32x16xf32>, vector<32x16xf32> -> vector<32x16xf32>
    %16 = arith.addf %9, %15 : vector<32x16xf32>
    %c1 = arith.constant 1 : index
    %c0_17 = arith.constant 0 : index
    %c0_18 = arith.constant 0 : index
    %17 = vector.load %arg12[%c1, %c0_17, %c0_18] : memref<4x16x16xf32, #tpu.memory_space<vmem>>, vector<1x16x16xf32>
    %18 = vector.shape_cast %17 : vector<1x16x16xf32> to vector<16x16xf32>
    %cst_19 = arith.constant dense<0.000000e+00> : vector<32x16xf32>
    %19 = tpu.matmul %6, %18, %cst_19 {dimension_numbers = #tpu.dot_dimension_numbers<[1], [0], [0], [1], [0, 0, 1, 1], [], []>} : vector<32x16xf32>, vector<16x16xf32>, vector<32x16xf32> -> vector<32x16xf32>
    %c0_20 = arith.constant 0 : index
    %c32 = arith.constant 32 : index
    %c0_21 = arith.constant 0 : index
    %20 = vector.load %arg7[%c0_20, %c32, %c0_21] : memref<1x128x32xf32, #tpu.memory_space<vmem>>, vector<1x32x32xf32>
    %21 = vector.shape_cast %20 : vector<1x32x32xf32> to vector<32x32xf32>
    %cst_22 = arith.constant dense<0.000000e+00> : vector<32x16xf32>
    %22 = tpu.matmul %21, %19, %cst_22 {dimension_numbers = #tpu.dot_dimension_numbers<[1], [0], [0], [1], [0, 0, 1, 1], [], []>} : vector<32x32xf32>, vector<32x16xf32>, vector<32x16xf32> -> vector<32x16xf32>
    %23 = arith.addf %16, %22 : vector<32x16xf32>
    %c2 = arith.constant 2 : index
    %c0_23 = arith.constant 0 : index
    %c0_24 = arith.constant 0 : index
    %24 = vector.load %arg12[%c2, %c0_23, %c0_24] : memref<4x16x16xf32, #tpu.memory_space<vmem>>, vector<1x16x16xf32>
    %25 = vector.shape_cast %24 : vector<1x16x16xf32> to vector<16x16xf32>
    %cst_25 = arith.constant dense<0.000000e+00> : vector<32x16xf32>
    %26 = tpu.matmul %6, %25, %cst_25 {dimension_numbers = #tpu.dot_dimension_numbers<[1], [0], [0], [1], [0, 0, 1, 1], [], []>} : vector<32x16xf32>, vector<16x16xf32>, vector<32x16xf32> -> vector<32x16xf32>
    %c0_26 = arith.constant 0 : index
    %c64 = arith.constant 64 : index
    %c0_27 = arith.constant 0 : index
    %27 = vector.load %arg7[%c0_26, %c64, %c0_27] : memref<1x128x32xf32, #tpu.memory_space<vmem>>, vector<1x32x32xf32>
    %28 = vector.shape_cast %27 : vector<1x32x32xf32> to vector<32x32xf32>
    %cst_28 = arith.constant dense<0.000000e+00> : vector<32x16xf32>
    %29 = tpu.matmul %28, %26, %cst_28 {dimension_numbers = #tpu.dot_dimension_numbers<[1], [0], [0], [1], [0, 0, 1, 1], [], []>} : vector<32x32xf32>, vector<32x16xf32>, vector<32x16xf32> -> vector<32x16xf32>
    %30 = arith.addf %23, %29 : vector<32x16xf32>
    %c3 = arith.constant 3 : index
    %c0_29 = arith.constant 0 : index
    %c0_30 = arith.constant 0 : index
    %31 = vector.load %arg12[%c3, %c0_29, %c0_30] : memref<4x16x16xf32, #tpu.memory_space<vmem>>, vector<1x16x16xf32>
    %32 = vector.shape_cast %31 : vector<1x16x16xf32> to vector<16x16xf32>
    %cst_31 = arith.constant dense<0.000000e+00> : vector<32x16xf32>
    %33 = tpu.matmul %6, %32, %cst_31 {dimension_numbers = #tpu.dot_dimension_numbers<[1], [0], [0], [1], [0, 0, 1, 1], [], []>} : vector<32x16xf32>, vector<16x16xf32>, vector<32x16xf32> -> vector<32x16xf32>
    %c0_32 = arith.constant 0 : index
    %c96 = arith.constant 96 : index
    %c0_33 = arith.constant 0 : index
    %34 = vector.load %arg7[%c0_32, %c96, %c0_33] : memref<1x128x32xf32, #tpu.memory_space<vmem>>, vector<1x32x32xf32>
    %35 = vector.shape_cast %34 : vector<1x32x32xf32> to vector<32x32xf32>
    %cst_34 = arith.constant dense<0.000000e+00> : vector<32x16xf32>
    %36 = tpu.matmul %35, %33, %cst_34 {dimension_numbers = #tpu.dot_dimension_numbers<[1], [0], [0], [1], [0, 0, 1, 1], [], []>} : vector<32x32xf32>, vector<32x16xf32>, vector<32x16xf32> -> vector<32x16xf32>
    %37 = arith.addf %30, %36 : vector<32x16xf32>
    %c0_35 = arith.constant 0 : index
    %c0_36 = arith.constant 0 : index
    %c0_37 = arith.constant 0 : index
    %38 = vector.load %arg8[%c0_35, %c0_36, %c0_37] : memref<1x96x32xf32, #tpu.memory_space<vmem>>, vector<1x32x32xf32>
    %39 = vector.shape_cast %38 : vector<1x32x32xf32> to vector<32x32xf32>
    %40 = arith.addf %6, %37 : vector<32x16xf32>
    %cst_38 = arith.constant dense<0.000000e+00> : vector<32x16xf32>
    %41 = tpu.matmul %39, %40, %cst_38 {dimension_numbers = #tpu.dot_dimension_numbers<[1], [0], [0], [1], [0, 0, 1, 1], [], []>} : vector<32x32xf32>, vector<32x16xf32>, vector<32x16xf32> -> vector<32x16xf32>
    %42 = vector.extract_strided_slice %5 {offsets = [0, 4], sizes = [32, 1], strides = [1, 1]} : vector<32x13xf32> to vector<32x1xf32>
    %43 = vector.broadcast %42 : vector<32x1xf32> to vector<32x16xf32>
    %44 = arith.addf %41, %43 : vector<32x16xf32>
    %45 = vector.extract_strided_slice %5 {offsets = [0, 5], sizes = [32, 1], strides = [1, 1]} : vector<32x13xf32> to vector<32x1xf32>
    %46 = vector.extract_strided_slice %5 {offsets = [0, 6], sizes = [32, 1], strides = [1, 1]} : vector<32x13xf32> to vector<32x1xf32>
    %cst_39 = arith.constant dense<0.000000e+00> : vector<32xf32>
    %47 = vector.multi_reduction <add>, %44, %cst_39 [1] : vector<32x16xf32> to vector<32xf32>
    %48 = vector.shape_cast %47 : vector<32xf32> to vector<32x1xf32>
    %cst_40 = arith.constant dense<0.000000e+00> : vector<32x1xf32>
    %49 = tpu.matmul %3, %48, %cst_40 {dimension_numbers = #tpu.dot_dimension_numbers<[1], [0], [0], [1], [0, 0, 1, 1], [], []>} : vector<32x32xf32>, vector<32x1xf32>, vector<32x1xf32> -> vector<32x1xf32>
    %cst_41 = arith.constant 3.125000e-02 : f32
    %50 = vector.broadcast %cst_41 : f32 to vector<32x1xf32>
    %51 = arith.mulf %49, %50 : vector<32x1xf32>
    %52 = vector.broadcast %51 : vector<32x1xf32> to vector<32x16xf32>
    %53 = arith.subf %44, %52 : vector<32x16xf32>
    %54 = arith.mulf %53, %53 : vector<32x16xf32>
    %cst_42 = arith.constant dense<0.000000e+00> : vector<32xf32>
    %55 = vector.multi_reduction <add>, %54, %cst_42 [1] : vector<32x16xf32> to vector<32xf32>
    %56 = vector.shape_cast %55 : vector<32xf32> to vector<32x1xf32>
    %cst_43 = arith.constant dense<0.000000e+00> : vector<32x1xf32>
    %57 = tpu.matmul %3, %56, %cst_43 {dimension_numbers = #tpu.dot_dimension_numbers<[1], [0], [0], [1], [0, 0, 1, 1], [], []>} : vector<32x32xf32>, vector<32x1xf32>, vector<32x1xf32> -> vector<32x1xf32>
    %cst_44 = arith.constant 3.125000e-02 : f32
    %58 = vector.broadcast %cst_44 : f32 to vector<32x1xf32>
    %59 = arith.mulf %57, %58 : vector<32x1xf32>
    %cst_45 = arith.constant 9.99999974E-6 : f32
    %60 = vector.broadcast %cst_45 : f32 to vector<32x1xf32>
    %61 = arith.addf %59, %60 : vector<32x1xf32>
    %62 = math.rsqrt %61 : vector<32x1xf32>
    %63 = arith.mulf %45, %62 : vector<32x1xf32>
    %64 = vector.broadcast %63 : vector<32x1xf32> to vector<32x16xf32>
    %65 = arith.mulf %53, %64 : vector<32x16xf32>
    %66 = vector.broadcast %46 : vector<32x1xf32> to vector<32x16xf32>
    %67 = arith.addf %65, %66 : vector<32x16xf32>
    %c0_46 = arith.constant 0 : index
    %c32_47 = arith.constant 32 : index
    %c0_48 = arith.constant 0 : index
    %68 = vector.load %arg8[%c0_46, %c32_47, %c0_48] : memref<1x96x32xf32, #tpu.memory_space<vmem>>, vector<1x32x32xf32>
    %69 = vector.shape_cast %68 : vector<1x32x32xf32> to vector<32x32xf32>
    %cst_49 = arith.constant dense<0.000000e+00> : vector<32x16xf32>
    %70 = tpu.matmul %69, %67, %cst_49 {dimension_numbers = #tpu.dot_dimension_numbers<[1], [0], [0], [1], [0, 0, 1, 1], [], []>} : vector<32x32xf32>, vector<32x16xf32>, vector<32x16xf32> -> vector<32x16xf32>
    %71 = vector.extract_strided_slice %5 {offsets = [0, 7], sizes = [32, 1], strides = [1, 1]} : vector<32x13xf32> to vector<32x1xf32>
    %72 = vector.broadcast %71 : vector<32x1xf32> to vector<32x16xf32>
    %73 = arith.addf %70, %72 : vector<32x16xf32>
    %74 = vector.extract_strided_slice %5 {offsets = [0, 8], sizes = [32, 1], strides = [1, 1]} : vector<32x13xf32> to vector<32x1xf32>
    %75 = vector.extract_strided_slice %5 {offsets = [0, 9], sizes = [32, 1], strides = [1, 1]} : vector<32x13xf32> to vector<32x1xf32>
    %cst_50 = arith.constant dense<0.000000e+00> : vector<32xf32>
    %76 = vector.multi_reduction <add>, %73, %cst_50 [1] : vector<32x16xf32> to vector<32xf32>
    %77 = vector.shape_cast %76 : vector<32xf32> to vector<32x1xf32>
    %cst_51 = arith.constant dense<0.000000e+00> : vector<32x1xf32>
    %78 = tpu.matmul %3, %77, %cst_51 {dimension_numbers = #tpu.dot_dimension_numbers<[1], [0], [0], [1], [0, 0, 1, 1], [], []>} : vector<32x32xf32>, vector<32x1xf32>, vector<32x1xf32> -> vector<32x1xf32>
    %cst_52 = arith.constant 3.125000e-02 : f32
    %79 = vector.broadcast %cst_52 : f32 to vector<32x1xf32>
    %80 = arith.mulf %78, %79 : vector<32x1xf32>
    %81 = vector.broadcast %80 : vector<32x1xf32> to vector<32x16xf32>
    %82 = arith.subf %73, %81 : vector<32x16xf32>
    %83 = arith.mulf %82, %82 : vector<32x16xf32>
    %cst_53 = arith.constant dense<0.000000e+00> : vector<32xf32>
    %84 = vector.multi_reduction <add>, %83, %cst_53 [1] : vector<32x16xf32> to vector<32xf32>
    %85 = vector.shape_cast %84 : vector<32xf32> to vector<32x1xf32>
    %cst_54 = arith.constant dense<0.000000e+00> : vector<32x1xf32>
    %86 = tpu.matmul %3, %85, %cst_54 {dimension_numbers = #tpu.dot_dimension_numbers<[1], [0], [0], [1], [0, 0, 1, 1], [], []>} : vector<32x32xf32>, vector<32x1xf32>, vector<32x1xf32> -> vector<32x1xf32>
    %cst_55 = arith.constant 3.125000e-02 : f32
    %87 = vector.broadcast %cst_55 : f32 to vector<32x1xf32>
    %88 = arith.mulf %86, %87 : vector<32x1xf32>
    %cst_56 = arith.constant 9.99999974E-6 : f32
    %89 = vector.broadcast %cst_56 : f32 to vector<32x1xf32>
    %90 = arith.addf %88, %89 : vector<32x1xf32>
    %91 = math.rsqrt %90 : vector<32x1xf32>
    %92 = arith.mulf %74, %91 : vector<32x1xf32>
    %93 = vector.broadcast %92 : vector<32x1xf32> to vector<32x16xf32>
    %94 = arith.mulf %82, %93 : vector<32x16xf32>
    %95 = vector.broadcast %75 : vector<32x1xf32> to vector<32x16xf32>
    %96 = arith.addf %94, %95 : vector<32x16xf32>
    %cst_57 = arith.constant 0.000000e+00 : f32
    %97 = vector.broadcast %cst_57 : f32 to vector<32x16xf32>
    %98 = arith.maximumf %96, %97 : vector<32x16xf32>
    %c0_58 = arith.constant 0 : index
    %c64_59 = arith.constant 64 : index
    %c0_60 = arith.constant 0 : index
    %99 = vector.load %arg8[%c0_58, %c64_59, %c0_60] : memref<1x96x32xf32, #tpu.memory_space<vmem>>, vector<1x32x32xf32>
    %100 = vector.shape_cast %99 : vector<1x32x32xf32> to vector<32x32xf32>
    %cst_61 = arith.constant dense<0.000000e+00> : vector<32x16xf32>
    %101 = tpu.matmul %100, %98, %cst_61 {dimension_numbers = #tpu.dot_dimension_numbers<[1], [0], [0], [1], [0, 0, 1, 1], [], []>} : vector<32x32xf32>, vector<32x16xf32>, vector<32x16xf32> -> vector<32x16xf32>
    %102 = vector.extract_strided_slice %5 {offsets = [0, 10], sizes = [32, 1], strides = [1, 1]} : vector<32x13xf32> to vector<32x1xf32>
    %103 = vector.broadcast %102 : vector<32x1xf32> to vector<32x16xf32>
    %104 = arith.addf %101, %103 : vector<32x16xf32>
    %105 = vector.extract_strided_slice %5 {offsets = [0, 11], sizes = [32, 1], strides = [1, 1]} : vector<32x13xf32> to vector<32x1xf32>
    %106 = vector.extract_strided_slice %5 {offsets = [0, 12], sizes = [32, 1], strides = [1, 1]} : vector<32x13xf32> to vector<32x1xf32>
    %cst_62 = arith.constant dense<0.000000e+00> : vector<32xf32>
    %107 = vector.multi_reduction <add>, %104, %cst_62 [1] : vector<32x16xf32> to vector<32xf32>
    %108 = vector.shape_cast %107 : vector<32xf32> to vector<32x1xf32>
    %cst_63 = arith.constant dense<0.000000e+00> : vector<32x1xf32>
    %109 = tpu.matmul %3, %108, %cst_63 {dimension_numbers = #tpu.dot_dimension_numbers<[1], [0], [0], [1], [0, 0, 1, 1], [], []>} : vector<32x32xf32>, vector<32x1xf32>, vector<32x1xf32> -> vector<32x1xf32>
    %cst_64 = arith.constant 3.125000e-02 : f32
    %110 = vector.broadcast %cst_64 : f32 to vector<32x1xf32>
    %111 = arith.mulf %109, %110 : vector<32x1xf32>
    %112 = vector.broadcast %111 : vector<32x1xf32> to vector<32x16xf32>
    %113 = arith.subf %104, %112 : vector<32x16xf32>
    %114 = arith.mulf %113, %113 : vector<32x16xf32>
    %cst_65 = arith.constant dense<0.000000e+00> : vector<32xf32>
    %115 = vector.multi_reduction <add>, %114, %cst_65 [1] : vector<32x16xf32> to vector<32xf32>
    %116 = vector.shape_cast %115 : vector<32xf32> to vector<32x1xf32>
    %cst_66 = arith.constant dense<0.000000e+00> : vector<32x1xf32>
    %117 = tpu.matmul %3, %116, %cst_66 {dimension_numbers = #tpu.dot_dimension_numbers<[1], [0], [0], [1], [0, 0, 1, 1], [], []>} : vector<32x32xf32>, vector<32x1xf32>, vector<32x1xf32> -> vector<32x1xf32>
    %cst_67 = arith.constant 3.125000e-02 : f32
    %118 = vector.broadcast %cst_67 : f32 to vector<32x1xf32>
    %119 = arith.mulf %117, %118 : vector<32x1xf32>
    %cst_68 = arith.constant 9.99999974E-6 : f32
    %120 = vector.broadcast %cst_68 : f32 to vector<32x1xf32>
    %121 = arith.addf %119, %120 : vector<32x1xf32>
    %122 = math.rsqrt %121 : vector<32x1xf32>
    %123 = arith.mulf %105, %122 : vector<32x1xf32>
    %124 = vector.broadcast %123 : vector<32x1xf32> to vector<32x16xf32>
    %125 = arith.mulf %113, %124 : vector<32x16xf32>
    %126 = vector.broadcast %106 : vector<32x1xf32> to vector<32x16xf32>
    %127 = arith.addf %125, %126 : vector<32x16xf32>
    %cst_69 = arith.constant 0.000000e+00 : f32
    %128 = vector.broadcast %cst_69 : f32 to vector<32x16xf32>
    %129 = arith.maximumf %127, %128 : vector<32x16xf32>
    %130 = arith.addf %67, %129 : vector<32x16xf32>
    %c0_70 = arith.constant 0 : index
    %c0_71 = arith.constant 0 : index
    %131 = vector.load %arg11[%c0_70, %c0_71] : memref<32x16xf32, #tpu.memory_space<vmem>>, vector<32x16xf32>
    tpu.vector_store %arg11[%c0_70, %c0_71], %130 {strides = array<i32>} : memref<32x16xf32, #tpu.memory_space<vmem>>, vector<32x16xf32>,
    %c5_i32 = arith.constant 5 : i32
    %132 = arith.cmpi eq, %arg1, %c5_i32 : i32
    %133 = arith.extui %132 : i1 to i32
    %c0_i32_72 = arith.constant 0 : i32
    %134 = arith.cmpi ne, %133, %c0_i32_72 : i32
    scf.if %134 {
      %c0_73 = arith.constant 0 : index
      %c0_74 = arith.constant 0 : index
      %c0_75 = arith.constant 0 : index
      %135 = vector.load %arg10[%c0_73, %c0_74, %c0_75] : memref<1x32x16xf32, #tpu.memory_space<vmem>>, vector<1x32x16xf32>
      %136 = vector.shape_cast %135 : vector<1x32x16xf32> to vector<32x16xf32>
      %137 = vector.shape_cast %130 : vector<32x16xf32> to vector<1x32x16xf32>
      tpu.vector_store %arg10[%c0_73, %c0_74, %c0_75], %137 {strides = array<i32>} : memref<1x32x16xf32, #tpu.memory_space<vmem>>, vector<1x32x16xf32>,
    } else {
    }
    return
  }
  func.func @transform_0(%arg0: i32, %arg1: i32) -> (i32, i32, i32) {
    %c0_i32 = arith.constant 0 : i32
    %c0_i32_0 = arith.constant 0 : i32
    %c0_i32_1 = arith.constant 0 : i32
    return %arg0, %c0_i32, %c0_i32_0 : i32, i32, i32
  }
  func.func @transform_1(%arg0: i32, %arg1: i32) -> (i32, i32, i32, i32) {
    %c0_i32 = arith.constant 0 : i32
    %c0_i32_0 = arith.constant 0 : i32
    %c0_i32_1 = arith.constant 0 : i32
    %c0_i32_2 = arith.constant 0 : i32
    return %arg0, %c0_i32, %c0_i32_0, %c0_i32_1 : i32, i32, i32, i32
  }
  func.func @transform_2(%arg0: i32, %arg1: i32) -> (i32, i32, i32) {
    %c0_i32 = arith.constant 0 : i32
    %c0_i32_0 = arith.constant 0 : i32
    %c0_i32_1 = arith.constant 0 : i32
    %c0_i32_2 = arith.constant 0 : i32
    return %c0_i32, %c0_i32_0, %c0_i32_1 : i32, i32, i32
  }
  func.func @transform_3(%arg0: i32, %arg1: i32) -> (i32, i32, i32) {
    %c0_i32 = arith.constant 0 : i32
    %c0_i32_0 = arith.constant 0 : i32
    %c0_i32_1 = arith.constant 0 : i32
    %c0_i32_2 = arith.constant 0 : i32
    return %c0_i32, %c0_i32_0, %c0_i32_1 : i32, i32, i32
  }
  func.func @transform_4(%arg0: i32, %arg1: i32) -> (i32, i32) {
    %c0_i32 = arith.constant 0 : i32
    %c0_i32_0 = arith.constant 0 : i32
    %c0_i32_1 = arith.constant 0 : i32
    return %c0_i32, %c0_i32_0 : i32, i32
  }
  func.func @transform_5(%arg0: i32, %arg1: i32) -> (i32, i32, i32) {
    %c0_i32 = arith.constant 0 : i32
    %c0_i32_0 = arith.constant 0 : i32
    %c0_i32_1 = arith.constant 0 : i32
    return %arg1, %c0_i32, %c0_i32_0 : i32, i32, i32
  }
  func.func @transform_6(%arg0: i32, %arg1: i32) -> (i32, i32, i32) {
    %c0_i32 = arith.constant 0 : i32
    %c0_i32_0 = arith.constant 0 : i32
    %c0_i32_1 = arith.constant 0 : i32
    return %arg1, %c0_i32, %c0_i32_0 : i32, i32, i32
  }
  func.func @transform_7(%arg0: i32, %arg1: i32) -> (i32, i32, i32) {
    %c0_i32 = arith.constant 0 : i32
    %c0_i32_0 = arith.constant 0 : i32
    %c0_i32_1 = arith.constant 0 : i32
    return %arg1, %c0_i32, %c0_i32_0 : i32, i32, i32
  }
  func.func @transform_8(%arg0: i32, %arg1: i32) -> (i32, i32, i32) {
    %c0_i32 = arith.constant 0 : i32
    %c0_i32_0 = arith.constant 0 : i32
    %c0_i32_1 = arith.constant 0 : i32
    return %arg0, %c0_i32, %c0_i32_0 : i32, i32, i32
  }
}

</mosaic_0001>

<bundles_post_ra>
// kernel: multiplicative_ff.1
= control target key start
LH: loop header
LB: loop body
LE: loop exit
PB: predicated region body
PF: predicated region fallthrough
CT: control target
= control target key end

     0   :  { %s3776_s27 = smov 0   ;;  %s3778_s28 = smov 0   ;;  %s4331_s0 = inlined_call_operand.vmem [shape: f32[2,32,16], index: 0, kind: input, shape index: {}]   ;;  %s4332_s1 = inlined_call_operand.vmem [shape: f32[2,4,16,16], index: 1, kind: input, shape index: {}]   ;;  %s4333_s2 = inlined_call_operand.vmem [shape: f32[4,16,16], index: 2, kind: input, shape index: {}]   ;;  %s4334_s3 = inlined_call_operand.vmem [shape: f32[4,16,16], index: 3, kind: input, shape index: {}]   ;;  %s4335_s4 = inlined_call_operand.vmem [shape: f32[32,32], index: 4, kind: input, shape index: {}]   ;;  %s4336_s5 = inlined_call_operand.vmem [shape: f32[6,128,32], index: 5, kind: input, shape index: {}]   ;;  %s4337_s6 = inlined_call_operand.vmem [shape: f32[6,96,32], index: 6, kind: input, shape index: {}]   ;;  %s4338_s7 = inlined_call_operand.vmem [shape: f32[6,32,13], index: 7, kind: input, shape index: {}]   ;;  %s4339_s8 = inlined_call_operand.vmem [shape: f32[2,32,16], index: 8, kind: output, shape index: {}]  }
   0x1   :  { %4340 = sst [smem:[#allocation7_spill]] %s4331_s0  ;;  %s3780_s29 = smov 0  }
   0x2   :  { %s3782_s30 = smov 0   ;;  %s3784_s9 = smov 0  }
   0x3 LB: > { %s27_s10 = sadd.s32 1, %s3708_s29  ;;  %s30_s11 = sadd.s32 1, %s3712_s30  ;;  %s3716_s9 = sphi %s3784_s9, %s18_s9   ;;  %s3712_s30 = sphi %s3782_s30, %s4349_s30   ;;  %s3708_s29 = sphi %s3780_s29, %s4348_s29   ;;  %s3704_s28 = sphi %s3778_s28, %s4347_s28   ;;  %s3700_s27 = sphi %s3776_s27, %s4346_s27  }
   0x4   : > { %p28_p0 = scmp.ge.s32.totalorder %s27_s10, 6  ;;  %p2906_p1 = scmp.ge.s32.totalorder %s3716_s9, 1 }
   0x5   : > { %p314_p2 = scmp.lt.s32.totalorder %s3716_s9, 13 }
   0x6   : > { %s4351_s10 = smov (%p28_p0, %s27_s10), 0  ;;  %s4353_s11 = smov (!%p28_p0, %s30_s11), %s3712_s30 }
   0x7   : > { %4341 = sst [smem:[#allocation5_spill]] %s4351_s10  ;;  %p315_p3 = pnand %p2906_p1, %p314_p2 }
   0x8   : > { %p32_p4 = scmp.ge.s32.totalorder %s4353_s11, 2  ;;  %p368_p5 = scmp.lt.s32.totalorder (!%p315_p3), %s3704_s28, 1 }
   0x9   : > { %318 = sbr.rel (%p315_p3) target bundleno = 4693 (0x1255), region = 52  ;;  %p378_p6 = scmp.lt.s32.totalorder (!%p315_p3), %s3700_s27, 5 }
   0xa   : > { %s4355_s11 = smov (%p32_p4, %s4353_s11), 0  ;;  %s4343_s0 = sld [smem:[#allocation7_spill]] (!%p315_p3) }
   0xb   : > { %4342 = sst [smem:[#allocation6_spill]] %s4355_s11  ;;  %p2918_p7 = scmp.ne.s32.totalorder (!%p315_p3), %s3700_s27, 0 }
  0x10   : > { %s4357_s28 = smov (!%p368_p5, %s3704_s28), 1  ;;  %v3844_v0 = vld [vmem:[%s4333_s2] sm:$0xff] (!%p2918_p7)  ;;  %v3850_v2 = vld [vmem:[%s4333_s2 + $0x8] sm:$0xff] (!%p2918_p7)  ;;  %v3856_v4 = vld [vmem:[%s4333_s2 + $0x10] sm:$0xff] (!%p2918_p7)  ;;  %vm432_vm0 = vcmask (!%p2918_p7), 130048   ;;  %vm579_vm9 = vcmask (!%p2918_p7), 1040384  }
  0x11   : > { %s379_s12 = scalar_select %p378_p6, %s3700_s27, 5 }
  0x12   : > { %s3013_s13 = sshll.u32 %s4357_s28, 5  ;;  %s3014_s14 = sshll.u32 %s4357_s28, 6  ;;  %v406_v1 = vmin.f32 (!%p2918_p7), %v3844_v0, 20.0  ;;  %v407_v3 = vmin.f32 (!%p2918_p7), %v3850_v2, 20.0  ;;  %v449_v6 = vmin.f32 (!%p2918_p7), %v3856_v4, 20.0  ;;  %v3862_v7 = vld [vmem:[%s4333_s2 + $0x18] sm:$0xff] (!%p2918_p7) }
  0x13   : > { %s3813_s17 = scalar_lea.vmem %s4343_s0, %s3013_s13  ;;  %s3818_s20 = scalar_lea.vmem %s4332_s1, %s3014_s14  ;;  %v450_v9 = vmin.f32 (!%p2918_p7), %v3862_v7, 20.0  ;;  %v3868_v10 = vld [vmem:[%s4333_s2 + $0x20] sm:$0xff] (!%p2918_p7)  ;;  %v3873_v12 = vld [vmem:[%s4333_s2 + $0x28] sm:$0xff] (!%p2918_p7)  ;;  %v3879_v15 = vld [vmem:[%s4333_s2 + $0x30] sm:$0xff] (!%p2918_p7)  ;;  %vm404_vm1 = vcmp.gt.f32.partialorder (!%p2918_p7), %v3844_v0, 20.0  ;;  %vm405_vm2 = vcmp.gt.f32.partialorder (!%p2918_p7), %v3850_v2, 20.0 }
  0x14   : > { %s3015_s21 = sshll.u32 %s379_s12, 7  ;;  %s3517_s22 = smul.u32 96, %s379_s12  ;;  %v408_v5 = vmul.f32 (!%p2918_p7), 1.442695, %v406_v1  ;;  %v410_v8 = vmul.f32 (!%p2918_p7), 1.442695, %v407_v3 }
  0x15   : > { %s3823_s25 = scalar_lea.vmem %s4336_s5, %s3015_s21  ;;  %s3016_s26 = sshll.u32 %s379_s12, 5  ;;  %v451_v11 = vmul.f32 (!%p2918_p7), 1.442695, %v449_v6  ;;  %v453_v13 = vmul.f32 (!%p2918_p7), 1.442695, %v450_v9  ;;  %v494_v14 = vmin.f32 (!%p2918_p7), %v3868_v10, 20.0 }
  0x16   : > { %s3828_s10 = scalar_lea.vmem %s4337_s6, %s3517_s22  ;;  %s3833_s0 = scalar_lea.vmem %s4338_s7, %s3016_s26  ;;  %3571 = vpow2.f32 (!%p2918_p7), %v408_v5  ;;  %v495_v16 = vmin.f32 (!%p2918_p7), %v3873_v12, 20.0  ;;  %v3885_v17 = vld [vmem:[%s4333_s2 + $0x38] sm:$0xff] (!%p2918_p7)  ;;  %v539_v19 = vmin.f32 (!%p2918_p7), %v3879_v15, 20.0  ;;  %v587_v22 = vld [vmem:[%s3813_s17] sm:$0xff] (!%p2918_p7)  ;;  %v588_v23 = vld [vmem:[%s3813_s17 + $0x8] sm:$0xff] (!%p2918_p7)  ;;  %vm447_vm3 = vcmp.gt.f32.partialorder (!%p2918_p7), %v3856_v4, 20.0 }
  0x17   : > { %s3838_s19 = scalar_lea.vmem %s4339_s8, %s3013_s13  ;;  %401 = sbr.rel (%p2918_p7) target bundleno = 90 (0x5a), region = 56  ;;  %3573 = vpow2.f32 (!%p2918_p7), %v410_v8  ;;  %v496_v18 = vmul.f32 (!%p2918_p7), 1.442695, %v494_v14  ;;  %v540_v21 = vmin.f32 (!%p2918_p7), %v3885_v17, 20.0  ;;  %591 = vst.msk [vmem:[#allocation2] sm:$0xff] (!%p2918_p7), %vm432_vm0, %v587_v22  ;;  %592 = vst.msk [vmem:[#allocation2 + $0x8] sm:$0xff] (!%p2918_p7), %vm432_vm0, %v588_v23 }
  0x18   : > { %3575 = vpow2.f32 (!%p2918_p7), %v451_v11  ;;  %v498_v20 = vmul.f32 (!%p2918_p7), 1.442695, %v495_v16  ;;  %v541_v24 = vmul.f32 (!%p2918_p7), 1.442695, %v539_v19  ;;  %v589_v25 = vld [vmem:[%s3813_s17 + $0x10] sm:$0xff] (!%p2918_p7)  ;;  %v590_v26 = vld [vmem:[%s3813_s17 + $0x18] sm:$0xff] (!%p2918_p7) }
  0x19   : > { %3577 = vpow2.f32 (!%p2918_p7), %v453_v13  ;;  %v543_v27 = vmul.f32 (!%p2918_p7), 1.442695, %v540_v21  ;;  %593 = vst.msk [vmem:[#allocation2 + $0x10] sm:$0xff] (!%p2918_p7), %vm432_vm0, %v589_v25  ;;  %594 = vst.msk [vmem:[#allocation2 + $0x18] sm:$0xff] (!%p2918_p7), %vm432_vm0, %v590_v26  ;;  %v420_v43 = vld [vmem:[%s3818_s20] sm:$0xff] (!%p2918_p7)  ;;  %v421_v46 = vld [vmem:[%s3818_s20 + $0x8] sm:$0xff] (!%p2918_p7) }
  0x1a   : > { %3579 = vpow2.f32 (!%p2918_p7), %v496_v18  ;;  %v422_v45 = vld [vmem:[%s4334_s3] sm:$0xff] (!%p2918_p7)  ;;  %v423_v47 = vld [vmem:[%s4334_s3 + $0x8] sm:$0xff] (!%p2918_p7)  ;;  %v2921_v48 = vld [vmem:[%s3818_s20 + $0x10] sm:$0xff] (!%p2918_p7)  ;;  %vm448_vm4 = vcmp.gt.f32.partialorder (!%p2918_p7), %v3862_v7, 20.0  ;;  %vm492_vm5 = vcmp.gt.f32.partialorder (!%p2918_p7), %v3868_v10, 20.0  ;;  %vm493_vm6 = vcmp.gt.f32.partialorder (!%p2918_p7), %v3873_v12, 20.0 }
  0x1b   : > { %3581 = vpow2.f32 (!%p2918_p7), %v498_v20  ;;  %v2923_v49 = vld [vmem:[%s4334_s3 + $0x10] sm:$0xff] (!%p2918_p7)  ;;  %v2922_v50 = vld [vmem:[%s3818_s20 + $0x18] sm:$0xff] (!%p2918_p7)  ;;  %v2927_v52 = vld [vmem:[%s3818_s20 + $0x20] sm:$0xff] (!%p2918_p7)  ;;  %v424_v55 = vadd.f32 (!%p2918_p7), %v422_v45, %v420_v43  ;;  %v425_v56 = vadd.f32 (!%p2918_p7), %v423_v47, %v421_v46  ;;  %vm537_vm7 = vcmp.gt.f32.partialorder (!%p2918_p7), %v3879_v15, 20.0 }
  0x1c   : > { %3583 = vpow2.f32 (!%p2918_p7), %v541_v24  ;;  %v2924_v51 = vld [vmem:[%s4334_s3 + $0x18] sm:$0xff] (!%p2918_p7)  ;;  %v2929_v53 = vld [vmem:[%s4334_s3 + $0x20] sm:$0xff] (!%p2918_p7)  ;;  %v2928_v57 = vld [vmem:[%s3818_s20 + $0x28] sm:$0xff] (!%p2918_p7)  ;;  %v469_v61 = vadd.f32 (!%p2918_p7), %v2923_v49, %v2921_v48  ;;  %vm538_vm8 = vcmp.gt.f32.partialorder (!%p2918_p7), %v3885_v17, 20.0  ;;  %vm581_vm10 = vcmask (!%p2918_p7), 1041408  }
  0x1d   : > { %3585 = vpow2.f32 (!%p2918_p7), %v543_v27  ;;  %v2930_v58 = vld [vmem:[%s4334_s3 + $0x28] sm:$0xff] (!%p2918_p7)  ;;  %v470_v1 = vadd.f32 (!%p2918_p7), %v2924_v51, %v2922_v50  ;;  %v514_v3 = vadd.f32 (!%p2918_p7), %v2929_v53, %v2927_v52  ;;  %v2933_v5 = vld [vmem:[%s3818_s20 + $0x30] sm:$0xff] (!%p2918_p7)  ;;  %v2934_v19 = vld [vmem:[%s3818_s20 + $0x38] sm:$0xff] (!%p2918_p7)  ;;  %vm583_vm11 = vcmask (!%p2918_p7), 1042432  }
  0x1e   : > { %v2935_v6 = vld [vmem:[%s4334_s3 + $0x30] sm:$0xff]  ;;  %v515_v13 = vadd.f32 %v2930_v58, %v2928_v57  ;;  %v2936_v20 = vld [vmem:[%s4334_s3 + $0x38] sm:$0xff]  ;;  %vm585_vm12 = vcmask 125952  }
  0x1f   : > { %v559_v23 = vadd.f32 %v2935_v6, %v2933_v5 }
  0x20   : > { %v3572_v28 = vpop.eup %3571 }
  0x21   : > { %v3574_v29 = vpop.eup %3573  ;;  %v412_v30 = vadd.f32 1.0, %v3572_v28 }
  0x22   : > { %v3576_v31 = vpop.eup %3575  ;;  %v413_v32 = vadd.f32 1.0, %v3574_v29 }
  0x23   : > { %v3578_v33 = vpop.eup %3577  ;;  %3587 = vlog2.f32 %v412_v30  ;;  %v455_v34 = vadd.f32 1.0, %v3576_v31 }
  0x24   : > { %3589 = vlog2.f32 %v413_v32  ;;  %v456_v35 = vadd.f32 1.0, %v3578_v33  ;;  %v3580_v36 = vpop.eup %3579  ;;  %v560_v32 = vadd.f32 %v2936_v20, %v2934_v19 }
  0x25   : > { %3591 = vlog2.f32 %v455_v34  ;;  %v3582_v37 = vpop.eup %3581  ;;  %v500_v38 = vadd.f32 1.0, %v3580_v36 }
  0x26   : > { %3593 = vlog2.f32 %v456_v35  ;;  %v3584_v39 = vpop.eup %3583  ;;  %v501_v40 = vadd.f32 1.0, %v3582_v37 }
  0x27   : > { %v3586_v41 = vpop.eup %3585  ;;  %3595 = vlog2.f32 %v500_v38  ;;  %v545_v42 = vadd.f32 1.0, %v3584_v39 }
  0x28   : > { %3597 = vlog2.f32 %v501_v40  ;;  %v546_v44 = vadd.f32 1.0, %v3586_v41 }
  0x29   : > { %3599 = vlog2.f32 %v545_v42 }
  0x2a   : > { %3601 = vlog2.f32 %v546_v44 }
  0x2d   : > { %v3588_v54 = vpop.eup %3587 }
  0x2e   : > { %v3590_v59 = vpop.eup %3589  ;;  %v415_v60 = vmul.f32 0.6931472, %v3588_v54 }
  0x2f   : > { %v3592_v62 = vpop.eup %3591  ;;  %v417_v63 = vmul.f32 0.6931472, %v3590_v59 }
  0x30   : > { %v3594_v8 = vpop.eup %3593  ;;  %v418_v9 = vsel %vm404_vm1, %v3844_v0, %v415_v60  ;;  %v458_v11 = vmul.f32 0.6931472, %v3592_v62 }
  0x31   : > { %v426_v14 = vmul.f32 %v424_v55, %v418_v9  ;;  %v419_v16 = vsel %vm405_vm2, %v3850_v2, %v417_v63  ;;  %v460_v18 = vmul.f32 0.6931472, %v3594_v8  ;;  %v3596_v21 = vpop.eup %3595 }
  0x32   : > { %v427_v22 = vmul.f32 %v425_v56, %v419_v16  ;;  %v461_v0 = vsel %vm447_vm3, %v3856_v4, %v458_v11  ;;  %v3598_v24 = vpop.eup %3597  ;;  %v503_v27 = vmul.f32 0.6931472, %v3596_v21 }
  0x33   : > { %v428_v25 = vmul.f32 1.442695, %v426_v14  ;;  %v471_v2 = vmul.f32 %v469_v61, %v461_v0  ;;  %v462_v26 = vsel %vm448_vm4, %v3862_v7, %v460_v18  ;;  %v3600_v28 = vpop.eup %3599  ;;  %v505_v31 = vmul.f32 0.6931472, %v3598_v24 }
  0x34   : > { %v430_v29 = vmul.f32 1.442695, %v427_v22  ;;  %v472_v30 = vmul.f32 %v470_v1, %v462_v26  ;;  %v3602_v33 = vpop.eup %3601  ;;  %v506_v4 = vsel %vm492_vm5, %v3868_v10, %v503_v27  ;;  %v548_v35 = vmul.f32 0.6931472, %v3600_v28 }
  0x35   : > { %3603 = vpow2.f32 %v428_v25  ;;  %v473_v34 = vmul.f32 1.442695, %v471_v2  ;;  %v516_v37 = vmul.f32 %v514_v3, %v506_v4  ;;  %v507_v7 = vsel %vm493_vm6, %v3873_v12, %v505_v31 }
  0x36   : > { %3605 = vpow2.f32 %v430_v29  ;;  %v475_v36 = vmul.f32 1.442695, %v472_v30  ;;  %v517_v38 = vmul.f32 %v515_v13, %v507_v7  ;;  %v551_v39 = vsel %vm537_vm7, %v3879_v15, %v548_v35 }
  0x37   : > { %3607 = vpow2.f32 %v473_v34  ;;  %v550_v40 = vmul.f32 0.6931472, %v3602_v33  ;;  %v518_v41 = vmul.f32 1.442695, %v516_v37  ;;  %v561_v42 = vmul.f32 %v559_v23, %v551_v39 }
  0x38   : > { %3609 = vpow2.f32 %v475_v36  ;;  %v520_v43 = vmul.f32 1.442695, %v517_v38 }
  0x39   : > { %v552_v10 = vsel %vm538_vm8, %v3885_v17, %v550_v40  ;;  %3611 = vpow2.f32 %v518_v41  ;;  %v563_v44 = vmul.f32 1.442695, %v561_v42 }
  0x3a   : > { %v562_v45 = vmul.f32 %v560_v32, %v552_v10  ;;  %3613 = vpow2.f32 %v520_v43 }
  0x3b   : > { %3615 = vpow2.f32 %v563_v44 }
  0x3c   : > { %v565_v12 = vmul.f32 1.442695, %v562_v45 }
  0x3e   : > { %3617 = vpow2.f32 %v565_v12 }
  0x3f   : > { %v3604_v46 = vpop.eup %3603 }
  0x40   : > { %v3606_v47 = vpop.eup %3605  ;;  %433 = vst.msk [vmem:[#allocation3] sm:$0xff] %vm432_vm0, %v3604_v46  ;;  %v435_v15 = vsel %vm432_vm0, %v3604_v46, 0.0 }
  0x41   : > { %v3608_v48 = vpop.eup %3607  ;;  %434 = vst.msk [vmem:[#allocation3 + $0x8] sm:$0xff] %vm432_vm0, %v3606_v47  ;;  %v436_v49 = vsel %vm432_vm0, %v3606_v47, 0.0 }
  0x42   : > { %v3610_v50 = vpop.eup %3609  ;;  %478 = vst.msk [vmem:[#allocation3 + $0x10] sm:$0xff] %vm432_vm0, %v3608_v48  ;;  %v437_v17 = vadd.f32 %v436_v49, %v435_v15  ;;  %v480_v51 = vsel %vm432_vm0, %v3608_v48, 0.0 }
  0x43   : > { %479 = vst.msk [vmem:[#allocation3 + $0x18] sm:$0xff] %vm432_vm0, %v3610_v50  ;;  %v481_v52 = vsel %vm432_vm0, %v3610_v50, 0.0  ;;  %v3612_v53 = vpop.eup %3611 }
  0x44   : > { %v438_v54 = vrot.slane %v437_v17, 4  ;;  %v482_v55 = vadd.f32 %v481_v52, %v480_v51  ;;  %v3614_v56 = vpop.eup %3613  ;;  %523 = vst.msk [vmem:[#allocation3 + $0x20] sm:$0xff] %vm432_vm0, %v3612_v53  ;;  %v525_v57 = vsel %vm432_vm0, %v3612_v53, 0.0 }
  0x45   : > { %v3616_v58 = vpop.eup %3615  ;;  %524 = vst.msk [vmem:[#allocation3 + $0x28] sm:$0xff] %vm432_vm0, %v3614_v56  ;;  %v526_v61 = vsel %vm432_vm0, %v3614_v56, 0.0 }
  0x46   : > { %v439_v59 = vadd.f32 %v438_v54, %v437_v17  ;;  %v483_v60 = vrot.slane %v482_v55, 4  ;;  %568 = vst.msk [vmem:[#allocation3 + $0x30] sm:$0xff] %vm432_vm0, %v3616_v58  ;;  %v527_v62 = vadd.f32 %v526_v61, %v525_v57  ;;  %v570_v63 = vsel %vm432_vm0, %v3616_v58, 0.0 }
  0x48   : > { %v3618_v1 = vpop.eup %3617  ;;  %v440_v3 = vrot.slane %v439_v59, 2  ;;  %v484_v5 = vadd.f32 %v483_v60, %v482_v55  ;;  %v528_v6 = vrot.slane %v527_v62, 4 }
  0x49   : > { %569 = vst.msk [vmem:[#allocation3 + $0x38] sm:$0xff] %vm432_vm0, %v3618_v1  ;;  %v571_v8 = vsel %vm432_vm0, %v3618_v1, 0.0 }
  0x4a   : > { %v441_v9 = vadd.f32 %v440_v3, %v439_v59  ;;  %v485_v11 = vrot.slane %v484_v5, 2  ;;  %v572_v13 = vadd.f32 %v571_v8, %v570_v63  ;;  %v529_v14 = vadd.f32 %v528_v6, %v527_v62 }
  0x4c   : > { %v442_v16 = vrot.slane %v441_v9, 1  ;;  %v486_v18 = vadd.f32 %v485_v11, %v484_v5  ;;  %v573_v19 = vrot.slane %v572_v13, 4  ;;  %v530_v20 = vrot.slane %v529_v14, 2 }
  0x4e   : > { %v443_v21 = vadd.f32 %v442_v16, %v441_v9  ;;  %v487_v22 = vrot.slane %v486_v18, 1  ;;  %v574_v0 = vadd.f32 %v573_v19, %v572_v13  ;;  %v531_v23 = vadd.f32 %v530_v20, %v529_v14 }
  0x50   : > { %v488_v24 = vadd.f32 %v487_v22, %v486_v18  ;;  %v575_v25 = vrot.slane %v574_v0, 2  ;;  %v532_v2 = vrot.slane %v531_v23, 1 }
  0x52   : > { %v576_v26 = vadd.f32 %v575_v25, %v574_v0  ;;  %v580_v27 = vsel %vm579_vm9, %v443_v21, %v488_v24  ;;  %v533_v28 = vadd.f32 %v532_v2, %v531_v23 }
  0x54   : > { %v577_v29 = vrot.slane %v576_v26, 1  ;;  %v582_v30 = vsel %vm581_vm10, %v580_v27, %v533_v28 }
  0x56   : > { %v578_v31 = vadd.f32 %v577_v29, %v576_v26 }
  0x58   : > { %v584_v32 = vsel %vm583_vm11, %v582_v30, %v578_v31 }
  0x59   : > { %586 = vst.msk [vmem:[#allocation4] sm:$0xf] %vm585_vm12, %v584_v32 }
  0x5a PF: > { %v608_v33 = vld [vmem:[#allocation3] sm:$0xff]  ;;  %v609_v34 = vld [vmem:[#allocation3 + $0x8] sm:$0xff]  ;;  %vm610_vm13 = vcmask 130048   ;;  %v913_v36 = vld [vmem:[#allocation3 + $0x10] sm:$0xff]  ;;  %vm712_vm14 = vcmask 261120   ;;  %vm823_vm15 = vcmask 1043456  }
  0x5b   : > { %v3977_v4 = vld [vmem:[#allocation2] sm:$0xff]  ;;  %v3381_v35 = vpack.c.bf16 %v609_v34, %v608_v33  ;;  %v914_v37 = vld [vmem:[#allocation3 + $0x18] sm:$0xff]  ;;  %v1107_v39 = vld [vmem:[#allocation3 + $0x28] sm:$0xff]  ;;  %vm810_vm0 = vcmask 31744   ;;  %v3718_v31 = vmov 4   ;;  %s3721_s16 = smov 5  }
  0x5c   : > { %3155 = vmatprep.mubr.msk.f32.mxu0 %vm610_vm13, %v3977_v4  ;;  %v1106_v7 = vld [vmem:[#allocation3 + $0x20] sm:$0xff]  ;;  %v3393_v38 = vpack.c.bf16 %v914_v37, %v913_v36  ;;  %v3981_v40 = vld [vmem:[#allocation2 + $0x8] sm:$0xff]  ;;  %v3983_v41 = vld [vmem:[#allocation2 + $0x10] sm:$0xff]  ;;  %3619 = vset.pattern.permute.xlu0 %v3718_v31  ;;  %s3725_s14 = smov 8   ;;  %p3010_p8 = scmp.ne.s32.totalorder %s3700_s27, 5 }
  0x5d   : > { %3382 = vmatprep.subr.bf16.mxu0 %v3381_v35  ;;  %v3405_v42 = vpack.c.bf16 %v1107_v39, %v1106_v7  ;;  %v3989_v43 = vld [vmem:[#allocation2 + $0x18] sm:$0xff]  ;;  %v1299_v10 = vld [vmem:[#allocation3 + $0x30] sm:$0xff]  ;;  %v708_v12 = vld [vmem:[%s3823_s25] sm:$0xff]  ;;  %3620 = vset.pattern.permute.xlu1 %v3718_v31 }
  0x5e   : > { %3384 = vmatpush3.bf16.msra.mxu0 %v3381_v35  ;;  %v1300_v44 = vld [vmem:[#allocation3 + $0x38] sm:$0xff]  ;;  %3169 = vmatprep.mubr.msk.f32.mxu1 %vm712_vm14, %v708_v12  ;;  %v709_v52 = vld [vmem:[%s3823_s25 + $0x8] sm:$0xff]  ;;  %v710_v54 = vld [vmem:[%s3823_s25 + $0x10] sm:$0xff] }
  0x5f   : > { %3394 = vmatprep.subr.bf16.mxu0 %v3393_v38  ;;  %v3417_v45 = vpack.c.bf16 %v1300_v44, %v1299_v10  ;;  %v711_v57 = vld [vmem:[%s3823_s25 + $0x18] sm:$0xff]  ;;  %v4025_v59 = vld [vmem:[%s3833_s0] sm:$0xff]  ;;  %v4031_v62 = vld [vmem:[%s3833_s0 + $0x8] sm:$0xff] }
  0x60   : > { %v607_v17 = vld [vmem:[#allocation4] sm:$0xf]  ;;  %v4034_v1 = vld [vmem:[%s3833_s0 + $0x10] sm:$0xff]  ;;  %v4041_v6 = vld [vmem:[%s3833_s0 + $0x18] sm:$0xff]  ;;  %1500 = vperm.xlu0 %3619, %v4025_v59  }
  0x61   : > { %3156 = vmatmul.mubr.msk.f32.vlgmr.msra.gmra.mrb[0].mxu0 %vm610_vm13, %v3981_v40  ;;  %v1000_v9 = vld [vmem:[%s3823_s25 + $0x20] sm:$0xff]  ;;  %v1001_v14 = vld [vmem:[%s3823_s25 + $0x28] sm:$0xff]  ;;  %v1002_v18 = vld [vmem:[%s3823_s25 + $0x30] sm:$0xff]  ;;  %1508 = vperm.xlu1 %3620, %v4034_v1  }
  0x62   : > { %3158 = vmatprep.mubr.msk.f32.mxu0 %vm610_vm13, %v3983_v41  ;;  %3396 = vmatpush3.bf16.msra.mxu0 %v3393_v38  ;;  %v1003_v21 = vld [vmem:[%s3823_s25 + $0x38] sm:$0xff]  ;;  %v1193_v0 = vld [vmem:[%s3823_s25 + $0x40] sm:$0xff]  ;;  %v1194_v24 = vld [vmem:[%s3823_s25 + $0x48] sm:$0xff] }
  0x63   : > { %3406 = vmatprep.subr.bf16.mxu0 %v3405_v42  ;;  %v1195_v25 = vld [vmem:[%s3823_s25 + $0x50] sm:$0xff]  ;;  %v1196_v2 = vld [vmem:[%s3823_s25 + $0x58] sm:$0xff]  ;;  %v1386_v26 = vld [vmem:[%s3823_s25 + $0x60] sm:$0xff] }
  0x64   : > { %v1387_v27 = vld [vmem:[%s3823_s25 + $0x68] sm:$0xff]  ;;  %v1388_v28 = vld [vmem:[%s3823_s25 + $0x70] sm:$0xff]  ;;  %v1389_v29 = vld [vmem:[%s3823_s25 + $0x78] sm:$0xff]  ;;  %1504 = vperm.xlu0 %3619, %v4031_v62  }
  0x65   : > { %3159 = vmatmul.mubr.msk.f32.gmra.mrb[2].mxu0 %vm610_vm13, %v3989_v43  ;;  %v1491_v30 = vld [vmem:[%s3828_s10] sm:$0xff]  ;;  %1512 = vperm.xlu1 %3620, %v4041_v6   ;;  %v1492_v10 = vld [vmem:[%s3828_s10 + $0x8] sm:$0xff]  ;;  %v1493_v44 = vld [vmem:[%s3828_s10 + $0x10] sm:$0xff] }
  0x66   : > { %3187 = vmatprep.mubr.msk.f32.mxu0 %vm610_vm13, %v3977_v4 }
  0x69   : > { %3188 = vmatmul.mubr.msk.f32.vlgmr.msra.gmra.mrb[4].mxu0 %vm610_vm13, %v3981_v40 }
  0x6a   : > { %3408 = vmatpush3.bf16.msra.mxu0 %v3405_v42  ;;  %3190 = vmatprep.mubr.msk.f32.mxu0 %vm610_vm13, %v3983_v41 }
  0x6b   : > { %3418 = vmatprep.subr.bf16.mxu0 %v3417_v45 }
  0x6d   : > { %3191 = vmatmul.mubr.msk.f32.gmra.mrb[6].mxu0 %vm610_vm13, %v3989_v43 }
  0x6e   : > { %3211 = vmatprep.mubr.msk.f32.mxu0 %vm610_vm13, %v3977_v4 }
  0x71   : > { %3212 = vmatmul.mubr.msk.f32.vlgmr.msra.gmra.mrb[8].mxu0 %vm610_vm13, %v3981_v40 }
  0x72   : > { %3420 = vmatpush3.bf16.msra.mxu0 %v3417_v45  ;;  %3214 = vmatprep.mubr.msk.f32.mxu0 %vm610_vm13, %v3983_v41 }
  0x75   : > { %3215 = vmatmul.mubr.msk.f32.gmra.mrb[10].mxu0 %vm610_vm13, %v3989_v43 }
  0x76   : > { %3235 = vmatprep.mubr.msk.f32.mxu0 %vm610_vm13, %v3977_v4 }
  0x79   : > { %3236 = vmatmul.mubr.msk.f32.vlgmr.msra.gmra.mrb[12].mxu0 %vm610_vm13, %v3981_v40 }
  0x7a   : > { %3238 = vmatprep.mubr.msk.f32.mxu0 %vm610_vm13, %v3983_v41 }
  0x7d   : > { %3239 = vmatmul.mubr.msk.f32.gmra.mrb[14].mxu0 %vm610_vm13, %v3989_v43 }
  0x7e   : > { %3263 = vmatprep.mubr.msk.f32.mxu0 %vm712_vm14, %v1491_v30 }
 0x134   : > { %v3157_v46 = vpop.f32.mrb[0].mxu0 }
 0x135   : > { %v689_v47 = vpop.f32.mrb[1].mxu0 }
 0x136   : > { %v3385_v15 = vpack.c.bf16 %v3157_v46, %v689_v47 }
 0x138   : > { %v3160_v48 = vpop.f32.mrb[2].mxu0  ;;  %3386 = vmatprep.subr.bf16.mxu1 %v3385_v15 }
 0x139   : > { %v699_v49 = vpop.f32.mrb[3].mxu0  ;;  %3388 = vmatpush3.bf16.msra.mxu1 %v3385_v15 }
 0x13a   : > { %v3389_v50 = vpack.c.bf16 %v3160_v48, %v699_v49 }
 0x13c   : > { %3390 = vmatprep.subr.bf16.mxu1 %v3389_v50  ;;  %v3189_v51 = vpop.f32.mrb[4].mxu0 }
 0x13d   : > { %3392 = vmatpush3.bf16.msra.mxu1 %v3389_v50  ;;  %v981_v53 = vpop.f32.mrb[5].mxu0 }
 0x13e   : > { %3175 = vmatprep.subr.msk.mxu1 %vm823_vm15, %v607_v17  ;;  %v3397_v55 = vpack.c.bf16 %v3189_v51, %v981_v53 }
 0x140   : > { %3170 = vmatmul.mubr.msk.f32.vlgmr.msra.gmra.mrb[0].mxu1 %vm712_vm14, %v709_v52  ;;  %v3192_v56 = vpop.f32.mrb[6].mxu0 }
 0x141   : > { %3176 = vmatpush3.msk.msra.mxu1 %vm823_vm15, %v607_v17  ;;  %3172 = vmatprep.mubr.msk.f32.mxu1 %vm712_vm14, %v710_v54  ;;  %v991_v58 = vpop.f32.mrb[7].mxu0 }
 0x142   : > { %3398 = vmatprep.subr.bf16.mxu1 %v3397_v55  ;;  %v3401_v60 = vpack.c.bf16 %v3192_v56, %v991_v58 }
 0x144   : > { %3173 = vmatmul.mubr.msk.f32.gmra.mrb[2].mxu1 %vm712_vm14, %v711_v57  ;;  %v3213_v61 = vpop.f32.mrb[8].mxu0 }
 0x145   : > { %3177 = vmatprep.mubr.msk.f32.mxu1 %vm810_vm0, %v4025_v59  ;;  %v1174_v63 = vpop.f32.mrb[9].mxu0 }
 0x146   : > { %v3409_v3 = vpack.c.bf16 %v3213_v61, %v1174_v63 }
 0x148   : > { %3178 = vmatmul.mubr.msk.f32.vlgmr.msra.gmra.mrb[0].mxu1 %vm810_vm0, %v4031_v62  ;;  %v3216_v5 = vpop.f32.mrb[10].mxu0 }
 0x149   : > { %3400 = vmatpush3.bf16.msra.mxu1 %v3397_v55  ;;  %3180 = vmatprep.mubr.msk.f32.mxu1 %vm810_vm0, %v4034_v1  ;;  %v1184_v8 = vpop.f32.mrb[11].mxu0  ;;  %v4092_v55 = vld [vmem:[%s4335_s4] sm:$0xff] }
 0x14a   : > { %3402 = vmatprep.subr.bf16.mxu1 %v3401_v60  ;;  %v3413_v11 = vpack.c.bf16 %v3216_v5, %v1184_v8  ;;  %v4106_v5 = vld [vmem:[%s4335_s4 + $0x10] sm:$0xff]  ;;  %v4115_v8 = vld [vmem:[%s4335_s4 + $0x18] sm:$0xff] }
 0x14c   : > { %3181 = vmatmul.mubr.msk.f32.gmra.mrb[2].mxu1 %vm810_vm0, %v4041_v6  ;;  %v3237_v13 = vpop.f32.mrb[12].mxu0 }
 0x14d   : > { %3404 = vmatpush3.bf16.msra.mxu1 %v3401_v60  ;;  %3201 = vmatprep.mubr.msk.f32.mxu1 %vm712_vm14, %v1000_v9  ;;  %v1367_v16 = vpop.f32.mrb[13].mxu0  ;;  %v3719_v9 = vmov 0  }
 0x14e   : > { %3410 = vmatprep.subr.bf16.mxu1 %v3409_v3  ;;  %v3421_v19 = vpack.c.bf16 %v3237_v13, %v1367_v16  ;;  %3621 = vset.pattern.permute.xlu0 %v3719_v9 }
 0x14f   : > { %3622 = vset.pattern.permute.xlu1 %v3719_v9 }
 0x150   : > { %3202 = vmatmul.mubr.msk.f32.vlgmr.msra.gmra.mrb[0].mxu1 %vm712_vm14, %v1001_v14  ;;  %v3240_v20 = vpop.f32.mrb[14].mxu0 }
 0x151   : > { %3412 = vmatpush3.bf16.msra.mxu1 %v3409_v3  ;;  %3204 = vmatprep.mubr.msk.f32.mxu1 %vm712_vm14, %v1002_v18  ;;  %v1377_v22 = vpop.f32.mrb[15].mxu0  ;;  %v4101_v3 = vld [vmem:[%s4335_s4 + $0x8] sm:$0xff] }
 0x152   : > { %3414 = vmatprep.subr.bf16.mxu1 %v3413_v11  ;;  %v3425_v23 = vpack.c.bf16 %v3240_v20, %v1377_v22 }
 0x154   : > { %3205 = vmatmul.mubr.msk.f32.gmra.mrb[2].mxu1 %vm712_vm14, %v1003_v21 }
 0x155   : > { %3416 = vmatpush3.bf16.msra.mxu1 %v3413_v11  ;;  %3225 = vmatprep.mubr.msk.f32.mxu1 %vm712_vm14, %v1193_v0 }
 0x156   : > { %3422 = vmatprep.subr.bf16.mxu1 %v3421_v19 }
 0x158   : > { %3226 = vmatmul.mubr.msk.f32.vlgmr.msra.gmra.mrb[0].mxu1 %vm712_vm14, %v1194_v24 }
 0x159   : > { %3424 = vmatpush3.bf16.msra.mxu1 %v3421_v19  ;;  %3228 = vmatprep.mubr.msk.f32.mxu1 %vm712_vm14, %v1195_v25 }
 0x15a   : > { %3426 = vmatprep.subr.bf16.mxu1 %v3425_v23 }
 0x15c   : > { %3229 = vmatmul.mubr.msk.f32.gmra.mrb[2].mxu1 %vm712_vm14, %v1196_v2 }
 0x15d   : > { %3428 = vmatpush3.bf16.msra.mxu1 %v3425_v23  ;;  %3249 = vmatprep.mubr.msk.f32.mxu1 %vm712_vm14, %v1386_v26 }
 0x160   : > { %3250 = vmatmul.mubr.msk.f32.vlgmr.msra.gmra.mrb[0].mxu1 %vm712_vm14, %v1387_v27 }
 0x161   : > { %3252 = vmatprep.mubr.msk.f32.mxu1 %vm712_vm14, %v1388_v28 }
 0x164   : > { %3253 = vmatmul.mubr.msk.f32.gmra.mrb[2].mxu1 %vm712_vm14, %v1389_v29 }
 0x165   : > { %3291 = vmatprep.mubr.msk.f32.mxu1 %vm712_vm14, %v4092_v55 }
 0x233   : > { %v3251_v32 = vpop.f32.mrb[0].mxu1 }
 0x234   : > { %v1496_v33 = vadd.f32 %v3251_v32, %v3981_v40  ;;  %v1468_v34 = vpop.f32.mrb[1].mxu1  ;;  %v1494_v40 = vld [vmem:[%s3828_s10 + $0x18] sm:$0xff] }
 0x235   : > { %v1495_v35 = vadd.f32 %v1468_v34, %v3977_v4  ;;  %v1501_v4 = vpop.permute.xlu0 %1500 }
 0x237   : > { %v3429_v36 = vpack.c.bf16 %v1496_v33, %v1495_v35  ;;  %v3254_v37 = vpop.f32.mrb[2].mxu1 }
 0x238   : > { %v1498_v7 = vadd.f32 %v3254_v37, %v3989_v43  ;;  %v1478_v38 = vpop.f32.mrb[3].mxu1  ;;  %v1509_v43 = vpop.permute.xlu1 %1508 }
 0x239   : > { %v1497_v39 = vadd.f32 %v1478_v38, %v3983_v41  ;;  %3430 = vmatprep.subr.bf16.mxu0 %v3429_v36  ;;  %v1505_v45 = vpop.permute.xlu0 %1504 }
 0x23a   : > { %3432 = vmatpush3.bf16.msra.mxu0 %v3429_v36 }
 0x23b   : > { %v3433_v42 = vpack.c.bf16 %v1498_v7, %v1497_v39 }
 0x23c   : > { %v1513_v50 = vpop.permute.xlu1 %1512 }
 0x23d   : > { %3434 = vmatprep.subr.bf16.mxu0 %v3433_v42 }
 0x23e   : > { %3436 = vmatpush3.bf16.msra.mxu0 %v3433_v42 }
 0x241   : > { %3264 = vmatmul.mubr.msk.f32.vlgmr.msra.gmra.mrb[16].mxu0 %vm712_vm14, %v1492_v10  ;;  %v3720_v10 = vmov 6  }
 0x242   : > { %3266 = vmatprep.mubr.msk.f32.mxu0 %vm712_vm14, %v1493_v44 }
 0x245   : > { %3267 = vmatmul.mubr.msk.f32.gmra.mrb[18].mxu0 %vm712_vm14, %v1494_v40 }
 0x246   : > { %3277 = vmatprep.mubr.msk.f32.mxu0 %vm712_vm14, %v4092_v55 }
 0x314   : > { %v3265_v12 = vpop.f32.mrb[16].mxu0 }
 0x315   : > { %v1599_v46 = vadd.f32 %v3265_v12, %v1505_v45  ;;  %v1593_v41 = vpop.f32.mrb[17].mxu0 }
 0x316   : > { %v1594_v47 = vadd.f32 %v1593_v41, %v1501_v4 }
 0x317   : > { %v1615_v15 = vsel %vm610_vm13, %v1599_v46, 0.0 }
 0x318   : > { %1616 = vadd.xlane.f32.xlu1 %v1615_v15  ;;  %v3268_v48 = vpop.f32.mrb[18].mxu0  ;;  %v1612_v49 = vsel %vm610_vm13, %v1594_v47, 0.0 }
 0x319   : > { %v1603_v17 = vpop.f32.mrb[19].mxu0  ;;  %1613 = vadd.xlane.f32.xlu0 %v1612_v49  ;;  %v1609_v52 = vadd.f32 %v3268_v48, %v1513_v50 }
 0x31a   : > { %v1604_v51 = vadd.f32 %v1603_v17, %v1509_v43 }
 0x31b   : > { %v1621_v54 = vsel %vm610_vm13, %v1609_v52, 0.0 }
 0x31c   : > { %v1618_v53 = vsel %vm610_vm13, %v1604_v51, 0.0 }
 0x31d   : > { %1619 = vadd.xlane.f32.xlu0 %v1618_v53  ;;  %v3722_v53 = vmov 5  }
 0x321   : > { %1622 = vadd.xlane.f32.xlu0 %v1621_v54 }
 0x3a5   : > { %v1617_v56 = vpop.xlane.xlu1 %1616 }
 0x3a6   : > { %v1614_v57 = vpop.xlane.xlu0 %1613 }
 0x3a7   : > { %v3437_v58 = vpack.c.bf16 %v1617_v56, %v1614_v57 }
 0x3a9   : > { %3438 = vmatprep.subr.bf16.mxu0 %v3437_v58 }
 0x3aa   : > { %3440 = vmatpush3.bf16.msra.mxu0 %v3437_v58  ;;  %v1620_v60 = vpop.xlane.xlu0 %1619 }
 0x3ae   : > { %v1623_v61 = vpop.xlane.xlu0 %1622 }
 0x3af   : > { %v3441_v63 = vpack.c.bf16 %v1623_v61, %v1620_v60 }
 0x3b1   : > { %3442 = vmatprep.subr.bf16.mxu0 %v3441_v63 }
 0x3b2   : > { %3444 = vmatpush3.bf16.msra.mxu0 %v3441_v63 }
 0x3b5   : > { %3278 = vmatmul.mubr.msk.f32.vlgmr.msra.gmra.mrb[20].mxu0 %vm712_vm14, %v4101_v3 }
 0x3b6   : > { %3280 = vmatprep.mubr.msk.f32.mxu0 %vm712_vm14, %v4106_v5 }
 0x3b9   : > { %3281 = vmatmul.mubr.msk.f32.gmra.mrb[22].mxu0 %vm712_vm14, %v4115_v8 }
 0x488   : > { %v3279_v11 = vpop.f32.mrb[20].mxu0 }
 0x489   : > { %v1722_v13 = vmul.f32 0.03125, %v3279_v11  ;;  %v1702_v14 = vpop.f32.mrb[21].mxu0 }
 0x48a   : > { %v1721_v16 = vmul.f32 0.03125, %v1702_v14  ;;  %v3723_v14 = vmov 7  }
 0x48b   : > { %1732 = vperm.xlu0 %3621, %v1722_v13   ;;  %v1926_v13 = vld [vmem:[%s3828_s10 + $0x20] sm:$0xff] }
 0x48c   : > { %1727 = vperm.xlu1 %3622, %v1721_v16   ;;  %v3282_v18 = vpop.f32.mrb[22].mxu0  ;;  %3305 = vmatprep.mubr.msk.f32.mxu0 %vm712_vm14, %v1926_v13 }
 0x48d   : > { %v1712_v19 = vpop.f32.mrb[23].mxu0  ;;  %v1724_v21 = vmul.f32 0.03125, %v3282_v18 }
 0x48e   : > { %v1723_v20 = vmul.f32 0.03125, %v1712_v19 }
 0x48f   : > { %3623 = vset.pattern.permute.xlu0 %v3720_v10 }
 0x490   : > { %1737 = vperm.xlu1 %3622, %v1723_v20  }
 0x494   : > { %1742 = vperm.xlu1 %3622, %v1724_v21  }
 0x498   : > { %3624 = vset.pattern.permute.xlu1 %v3720_v10 }
 0x50a   : > { %v1733_v22 = vpop.permute.xlu0 %1732 }
 0x50b   : > { %v4121_v0 = vsub.f32 %v1599_v46, %v1733_v22  ;;  %v1728_v23 = vpop.permute.xlu1 %1727 }
 0x50c   : > { %v4123_v24 = vsub.f32 %v1594_v47, %v1728_v23 }
 0x50d   : > { %v1750_v25 = vmul.f32 %v4121_v0, %v4121_v0 }
 0x50e   : > { %v1749_v2 = vmul.f32 %v4123_v24, %v4123_v24 }
 0x50f   : > { %v1738_v26 = vpop.permute.xlu1 %1737  ;;  %v1756_v27 = vsel %vm610_vm13, %v1750_v25, 0.0 }
 0x510   : > { %v4130_v28 = vsub.f32 %v1604_v51, %v1738_v26  ;;  %1757 = vadd.xlane.f32.xlu0 %v1756_v27  ;;  %v1753_v29 = vsel %vm610_vm13, %v1749_v2, 0.0 }
 0x511   : > { %1754 = vadd.xlane.f32.xlu1 %v1753_v29 }
 0x512   : > { %v1751_v30 = vmul.f32 %v4130_v28, %v4130_v28 }
 0x513   : > { %v1743_v31 = vpop.permute.xlu1 %1742 }
 0x514   : > { %v4135_v32 = vsub.f32 %v1609_v52, %v1743_v31  ;;  %v1759_v33 = vsel %vm610_vm13, %v1751_v30, 0.0 }
 0x515   : > { %1760 = vadd.xlane.f32.xlu1 %v1759_v33 }
 0x516   : > { %v1752_v34 = vmul.f32 %v4135_v32, %v4135_v32 }
 0x518   : > { %v1762_v35 = vsel %vm610_vm13, %v1752_v34, 0.0 }
 0x519   : > { %1763 = vadd.xlane.f32.xlu1 %v1762_v35  ;;  %v1927_v35 = vld [vmem:[%s3828_s10 + $0x28] sm:$0xff] }
 0x59d   : > { %v1758_v36 = vpop.xlane.xlu0 %1757 }
 0x59e   : > { %v1755_v37 = vpop.xlane.xlu1 %1754 }
 0x59f   : > { %v3445_v7 = vpack.c.bf16 %v1758_v36, %v1755_v37  ;;  %v1928_v36 = vld [vmem:[%s3828_s10 + $0x30] sm:$0xff]  ;;  %v1929_v37 = vld [vmem:[%s3828_s10 + $0x38] sm:$0xff] }
 0x5a1   : > { %3446 = vmatprep.subr.bf16.mxu1 %v3445_v7 }
 0x5a2   : > { %3448 = vmatpush3.bf16.msra.mxu1 %v3445_v7  ;;  %v1761_v38 = vpop.xlane.xlu1 %1760 }
 0x5a6   : > { %v1764_v39 = vpop.xlane.xlu1 %1763 }
 0x5a7   : > { %v3449_v42 = vpack.c.bf16 %v1764_v39, %v1761_v38 }
 0x5a9   : > { %3450 = vmatprep.subr.bf16.mxu1 %v3449_v42 }
 0x5aa   : > { %3452 = vmatpush3.bf16.msra.mxu1 %v3449_v42 }
 0x5ad   : > { %3292 = vmatmul.mubr.msk.f32.vlgmr.msra.gmra.mrb[4].mxu1 %vm712_vm14, %v4101_v3 }
 0x5ae   : > { %3294 = vmatprep.mubr.msk.f32.mxu1 %vm712_vm14, %v4106_v5 }
 0x5b1   : > { %3295 = vmatmul.mubr.msk.f32.gmra.mrb[6].mxu1 %vm712_vm14, %v4115_v8 }
 0x5b2   : > { %3319 = vmatprep.mubr.msk.f32.mxu1 %vm712_vm14, %v4092_v55 }
 0x680   : > { %v3293_v44 = vpop.f32.mrb[4].mxu1 }
 0x681   : > { %v1851_v40 = vmul.f32 0.03125, %v3293_v44  ;;  %v1831_v4 = vpop.f32.mrb[5].mxu1 }
 0x682   : > { %v1850_v45 = vmul.f32 0.03125, %v1831_v4 }
 0x683   : > { %v1855_v43 = vadd.f32 1e-05, %v1851_v40 }
 0x684   : > { %v1854_v12 = vadd.f32 1e-05, %v1850_v45  ;;  %v3296_v46 = vpop.f32.mrb[6].mxu1 }
 0x685   : > { %3650 = vrsqrt.f32 %v1855_v43  ;;  %v1853_v41 = vmul.f32 0.03125, %v3296_v46  ;;  %v1841_v47 = vpop.f32.mrb[7].mxu1 }
 0x686   : > { %3652 = vrsqrt.f32 %v1854_v12  ;;  %v1852_v15 = vmul.f32 0.03125, %v1841_v47 }
 0x687   : > { %v1857_v48 = vadd.f32 1e-05, %v1853_v41 }
 0x688   : > { %v1856_v49 = vadd.f32 1e-05, %v1852_v15 }
 0x68a   : > { %3654 = vrsqrt.f32 %v1856_v49 }
 0x68b   : > { %3656 = vrsqrt.f32 %v1857_v48 }
 0x68f   : > { %v3651_v50 = vpop.eup %3650 }
 0x690   : > { %v3653_v17 = vpop.eup %3652  ;;  %1868 = vrot.lane.b32.xlu0 %v3651_v50, %s3721_s16 }
 0x691   : > { %1866 = vrot.lane.b32.xlu1 %v3653_v17, %s3721_s16 }
 0x694   : > { %v3655_v51 = vpop.eup %3654  ;;  %1907 = vperm.xlu0 %3623, %v4025_v59  }
 0x695   : > { %1870 = vrot.lane.b32.xlu1 %v3655_v51, %s3721_s16  ;;  %v3657_v52 = vpop.eup %3656 }
 0x698   : > { %3626 = vset.pattern.permute.xlu0 %v3722_v53 }
 0x699   : > { %1872 = vrot.lane.b32.xlu1 %v3657_v52, %s3721_s16 }
 0x69d   : > { %1911 = vperm.xlu1 %3624, %v4031_v62  }
 0x6a1   : > { %3625 = vset.pattern.permute.xlu1 %v3722_v53 }
 0x702   : > { %v1869_v54 = vpop.permute.xlu0 %1868 }
 0x703   : > { %v1879_v56 = vmul.f32 %v1869_v54, %v4031_v62  ;;  %v1867_v57 = vpop.permute.xlu1 %1866 }
 0x704   : > { %v1878_v58 = vmul.f32 %v1867_v57, %v4025_v59 }
 0x705   : > { %1889 = vperm.xlu1 %3625, %v1879_v56  }
 0x707   : > { %v1871_v60 = vpop.permute.xlu1 %1870 }
 0x708   : > { %v1880_v11 = vmul.f32 %v1871_v60, %v4034_v1 }
 0x709   : > { %1884 = vperm.xlu1 %3625, %v1878_v58  }
 0x70b   : > { %v1873_v61 = vpop.permute.xlu1 %1872 }
 0x70c   : > { %v1881_v63 = vmul.f32 %v1873_v61, %v4041_v6 }
 0x70d   : > { %3627 = vset.pattern.permute.xlu1 %v3720_v10 }
 0x70e   : > { %1915 = vperm.xlu1 %3627, %v4034_v1   ;;  %1899 = vperm.xlu0 %3626, %v1881_v63  }
 0x712   : > { %3628 = vset.pattern.permute.xlu1 %v3722_v53  ;;  %3630 = vset.pattern.permute.xlu0 %v3723_v14 }
 0x713   : > { %1894 = vperm.xlu1 %3628, %v1880_v11   ;;  %1931 = vperm.xlu0 %3630, %v4025_v59   ;;  %v1908_v21 = vpop.permute.xlu0 %1907 }
 0x717   : > { %3629 = vset.pattern.permute.xlu1 %v3720_v10  ;;  %1943 = vperm.xlu0 %3630, %v4041_v6  }
 0x718   : > { %1919 = vperm.xlu1 %3629, %v4041_v6  }
 0x71b   : > { %3632 = vset.pattern.permute.xlu0 %v3719_v9 }
 0x71c   : > { %3631 = vset.pattern.permute.xlu1 %v3723_v14  ;;  %v1912_v16 = vpop.permute.xlu1 %1911 }
 0x71d   : > { %1935 = vperm.xlu1 %3631, %v4031_v62  }
 0x721   : > { %1939 = vperm.xlu1 %3631, %v4034_v1  }
 0x725   : > { %3633 = vset.pattern.permute.xlu1 %v3719_v9 }
 0x784   : > { %v1890_v18 = vpop.permute.xlu1 %1889 }
 0x785   : > { %v1903_v19 = vmul.f32 %v1890_v18, %v4121_v0 }
 0x787   : > { %v4167_v23 = vadd.f32 %v1912_v16, %v1903_v19 }
 0x788   : > { %v1885_v20 = vpop.permute.xlu1 %1884 }
 0x789   : > { %v1902_v22 = vmul.f32 %v1885_v20, %v4123_v24 }
 0x78b   : > { %v4169_v25 = vadd.f32 %v1908_v21, %v1902_v22 }
 0x78d   : > { %v3453_v2 = vpack.c.bf16 %v4167_v23, %v4169_v25  ;;  %v1916_v26 = vpop.permute.xlu1 %1915  ;;  %v1900_v29 = vpop.permute.xlu0 %1899 }
 0x78e   : > { %v1905_v30 = vmul.f32 %v1900_v29, %v4135_v32 }
 0x78f   : > { %3454 = vmatprep.subr.bf16.mxu0 %v3453_v2 }
 0x790   : > { %3456 = vmatpush3.bf16.msra.mxu0 %v3453_v2 }
 0x792   : > { %v1895_v27 = vpop.permute.xlu1 %1894 }
 0x793   : > { %v1904_v0 = vmul.f32 %v1895_v27, %v4130_v28  ;;  %v1932_v28 = vpop.permute.xlu0 %1931 }
 0x795   : > { %v4175_v31 = vadd.f32 %v1916_v26, %v1904_v0 }
 0x797   : > { %v1920_v24 = vpop.permute.xlu1 %1919  ;;  %v1944_v44 = vpop.permute.xlu0 %1943 }
 0x798   : > { %v4177_v33 = vadd.f32 %v1920_v24, %v1905_v30 }
 0x79a   : > { %v3457_v34 = vpack.c.bf16 %v4177_v33, %v4175_v31 }
 0x79c   : > { %3458 = vmatprep.subr.bf16.mxu0 %v3457_v34  ;;  %v1936_v32 = vpop.permute.xlu1 %1935 }
 0x79d   : > { %3460 = vmatpush3.bf16.msra.mxu0 %v3457_v34 }
 0x7a0   : > { %3306 = vmatmul.mubr.msk.f32.vlgmr.msra.gmra.mrb[24].mxu0 %vm712_vm14, %v1927_v35  ;;  %v1940_v45 = vpop.permute.xlu1 %1939 }
 0x7a1   : > { %3308 = vmatprep.mubr.msk.f32.mxu0 %vm712_vm14, %v1928_v36 }
 0x7a4   : > { %3309 = vmatmul.mubr.msk.f32.gmra.mrb[26].mxu0 %vm712_vm14, %v1929_v37 }
 0x7a5   : > { %3333 = vmatprep.mubr.msk.f32.mxu0 %vm712_vm14, %v4092_v55 }
 0x873   : > { %v3307_v7 = vpop.f32.mrb[24].mxu0 }
 0x874   : > { %v2030_v38 = vadd.f32 %v3307_v7, %v1936_v32  ;;  %v2024_v39 = vpop.f32.mrb[25].mxu0  ;;  %v3724_v32 = vmov 9  }
 0x875   : > { %v2025_v42 = vadd.f32 %v2024_v39, %v1932_v28 }
 0x876   : > { %v2046_v10 = vsel %vm610_vm13, %v2030_v38, 0.0 }
 0x877   : > { %v3310_v40 = vpop.f32.mrb[26].mxu0  ;;  %2047 = vadd.xlane.f32.xlu0 %v2046_v10  ;;  %v2043_v4 = vsel %vm610_vm13, %v2025_v42, 0.0 }
 0x878   : > { %v2040_v43 = vadd.f32 %v3310_v40, %v1944_v44  ;;  %v2034_v12 = vpop.f32.mrb[27].mxu0  ;;  %2044 = vadd.xlane.f32.xlu1 %v2043_v4 }
 0x879   : > { %v2035_v46 = vadd.f32 %v2034_v12, %v1940_v45 }
 0x87a   : > { %v2052_v41 = vsel %vm610_vm13, %v2040_v43, 0.0 }
 0x87b   : > { %v2049_v47 = vsel %vm610_vm13, %v2035_v46, 0.0 }
 0x87c   : > { %2053 = vadd.xlane.f32.xlu1 %v2052_v41  ;;  %2050 = vadd.xlane.f32.xlu0 %v2049_v47 }
 0x904   : > { %v2048_v15 = vpop.xlane.xlu0 %2047 }
 0x905   : > { %v2045_v48 = vpop.xlane.xlu1 %2044 }
 0x906   : > { %v3461_v49 = vpack.c.bf16 %v2048_v15, %v2045_v48 }
 0x908   : > { %3462 = vmatprep.subr.bf16.mxu1 %v3461_v49 }
 0x909   : > { %v2051_v50 = vpop.xlane.xlu0 %2050  ;;  %3464 = vmatpush3.bf16.msra.mxu1 %v3461_v49  ;;  %v2054_v17 = vpop.xlane.xlu1 %2053  ;;  %v3726_v49 = vmov 8  }
 0x90a   : > { %v3465_v51 = vpack.c.bf16 %v2054_v17, %v2051_v50 }
 0x90c   : > { %3466 = vmatprep.subr.bf16.mxu1 %v3465_v51 }
 0x90d   : > { %3468 = vmatpush3.bf16.msra.mxu1 %v3465_v51 }
 0x910   : > { %3320 = vmatmul.mubr.msk.f32.vlgmr.msra.gmra.mrb[8].mxu1 %vm712_vm14, %v4101_v3 }
 0x911   : > { %3322 = vmatprep.mubr.msk.f32.mxu1 %vm712_vm14, %v4106_v5 }
 0x914   : > { %3323 = vmatmul.mubr.msk.f32.gmra.mrb[10].mxu1 %vm712_vm14, %v4115_v8 }
 0x9e3   : > { %v3321_v52 = vpop.f32.mrb[8].mxu1 }
 0x9e4   : > { %v2141_v53 = vmul.f32 0.03125, %v3321_v52  ;;  %v2121_v54 = vpop.f32.mrb[9].mxu1 }
 0x9e5   : > { %v2140_v56 = vmul.f32 0.03125, %v2121_v54 }
 0x9e6   : > { %2151 = vperm.xlu1 %3633, %v2141_v53  }
 0x9e7   : > { %2146 = vperm.xlu0 %3632, %v2140_v56   ;;  %v3324_v57 = vpop.f32.mrb[10].mxu1 }
 0x9e8   : > { %v2131_v58 = vpop.f32.mrb[11].mxu1  ;;  %v2143_v61 = vmul.f32 0.03125, %v3324_v57 }
 0x9e9   : > { %v2142_v60 = vmul.f32 0.03125, %v2131_v58  ;;  %v2349_v58 = vld [vmem:[%s3828_s10 + $0x40] sm:$0xff] }
 0x9ea   : > { %3347 = vmatprep.mubr.msk.f32.mxu1 %vm712_vm14, %v2349_v58 }
 0x9eb   : > { %2156 = vperm.xlu1 %3633, %v2142_v60   ;;  %3635 = vset.pattern.permute.xlu0 %v3724_v32  ;;  %v3727_v60 = vmov 10  }
 0x9ef   : > { %2161 = vperm.xlu1 %3633, %v2143_v61  }
 0x9f3   : > { %3634 = vset.pattern.permute.xlu1 %v3724_v32 }
 0xa65   : > { %v2152_v63 = vpop.permute.xlu1 %2151 }
 0xa66   : > { %v4199_v11 = vsub.f32 %v2030_v38, %v2152_v63  ;;  %v2147_v13 = vpop.permute.xlu0 %2146 }
 0xa67   : > { %v4201_v14 = vsub.f32 %v2025_v42, %v2147_v13 }
 0xa68   : > { %v2169_v16 = vmul.f32 %v4199_v11, %v4199_v11 }
 0xa69   : > { %v2168_v18 = vmul.f32 %v4201_v14, %v4201_v14 }
 0xa6a   : > { %v2157_v19 = vpop.permute.xlu1 %2156  ;;  %v2175_v20 = vsel %vm610_vm13, %v2169_v16, 0.0 }
 0xa6b   : > { %v4208_v21 = vsub.f32 %v2035_v46, %v2157_v19  ;;  %2176 = vadd.xlane.f32.xlu0 %v2175_v20  ;;  %v2172_v22 = vsel %vm610_vm13, %v2168_v18, 0.0 }
 0xa6c   : > { %2173 = vadd.xlane.f32.xlu1 %v2172_v22 }
 0xa6d   : > { %v2170_v2 = vmul.f32 %v4208_v21, %v4208_v21 }
 0xa6e   : > { %v2162_v26 = vpop.permute.xlu1 %2161 }
 0xa6f   : > { %v4213_v27 = vsub.f32 %v2040_v43, %v2162_v26  ;;  %v2178_v29 = vsel %vm610_vm13, %v2170_v2, 0.0 }
 0xa70   : > { %2179 = vadd.xlane.f32.xlu1 %v2178_v29 }
 0xa71   : > { %v2171_v0 = vmul.f32 %v4213_v27, %v4213_v27 }
 0xa73   : > { %v2181_v30 = vsel %vm610_vm13, %v2171_v0, 0.0 }
 0xa74   : > { %2182 = vadd.xlane.f32.xlu1 %v2181_v30 }
 0xaf8   : > { %v2177_v24 = vpop.xlane.xlu0 %2176 }
 0xaf9   : > { %v2174_v34 = vpop.xlane.xlu1 %2173 }
 0xafa   : > { %v3469_v35 = vpack.c.bf16 %v2177_v24, %v2174_v34 }
 0xafc   : > { %3470 = vmatprep.subr.bf16.mxu0 %v3469_v35 }
 0xafd   : > { %3472 = vmatpush3.bf16.msra.mxu0 %v3469_v35  ;;  %v2180_v36 = vpop.xlane.xlu1 %2179  ;;  %v2350_v35 = vld [vmem:[%s3828_s10 + $0x48] sm:$0xff] }
 0xb01   : > { %v2183_v37 = vpop.xlane.xlu1 %2182 }
 0xb02   : > { %v3473_v28 = vpack.c.bf16 %v2183_v37, %v2180_v36  ;;  %v2351_v36 = vld [vmem:[%s3828_s10 + $0x50] sm:$0xff]  ;;  %v2352_v37 = vld [vmem:[%s3828_s10 + $0x58] sm:$0xff]  ;;  %s3729_s10 = smov 11  }
 0xb04   : > { %3474 = vmatprep.subr.bf16.mxu0 %v3473_v28 }
 0xb05   : > { %3476 = vmatpush3.bf16.msra.mxu0 %v3473_v28 }
 0xb08   : > { %3334 = vmatmul.mubr.msk.f32.vlgmr.msra.gmra.mrb[28].mxu0 %vm712_vm14, %v4101_v3 }
 0xb09   : > { %3336 = vmatprep.mubr.msk.f32.mxu0 %vm712_vm14, %v4106_v5 }
 0xb0c   : > { %3337 = vmatmul.mubr.msk.f32.gmra.mrb[30].mxu0 %vm712_vm14, %v4115_v8 }
 0xb0d   : > { %3361 = vmatprep.mubr.msk.f32.mxu0 %vm712_vm14, %v4092_v55 }
 0xbdb   : > { %v3335_v7 = vpop.f32.mrb[28].mxu0 }
 0xbdc   : > { %v2270_v38 = vmul.f32 0.03125, %v3335_v7  ;;  %v2250_v39 = vpop.f32.mrb[29].mxu0 }
 0xbdd   : > { %v2269_v42 = vmul.f32 0.03125, %v2250_v39 }
 0xbde   : > { %v2274_v10 = vadd.f32 1e-05, %v2270_v38 }
 0xbdf   : > { %v2273_v44 = vadd.f32 1e-05, %v2269_v42  ;;  %v3338_v40 = vpop.f32.mrb[30].mxu0 }
 0xbe0   : > { %3658 = vrsqrt.f32 %v2274_v10  ;;  %v2260_v4 = vpop.f32.mrb[31].mxu0  ;;  %v2272_v45 = vmul.f32 0.03125, %v3338_v40 }
 0xbe1   : > { %3660 = vrsqrt.f32 %v2273_v44  ;;  %v2271_v43 = vmul.f32 0.03125, %v2260_v4 }
 0xbe2   : > { %v2276_v46 = vadd.f32 1e-05, %v2272_v45 }
 0xbe3   : > { %v2275_v12 = vadd.f32 1e-05, %v2271_v43 }
 0xbe5   : > { %3662 = vrsqrt.f32 %v2275_v12 }
 0xbe6   : > { %3664 = vrsqrt.f32 %v2276_v46 }
 0xbea   : > { %v3659_v41 = vpop.eup %3658 }
 0xbeb   : > { %v3661_v47 = vpop.eup %3660  ;;  %2287 = vrot.lane.b32.xlu0 %v3659_v41, %s3725_s14 }
 0xbec   : > { %2285 = vrot.lane.b32.xlu1 %v3661_v47, %s3725_s14 }
 0xbef   : > { %v3663_v15 = vpop.eup %3662  ;;  %2330 = vperm.xlu0 %3635, %v4031_v62  }
 0xbf0   : > { %2289 = vrot.lane.b32.xlu1 %v3663_v15, %s3725_s14  ;;  %v3665_v48 = vpop.eup %3664 }
 0xbf3   : > { %3637 = vset.pattern.permute.xlu0 %v3726_v49 }
 0xbf4   : > { %2291 = vrot.lane.b32.xlu1 %v3665_v48, %s3725_s14 }
 0xbf8   : > { %2326 = vperm.xlu1 %3634, %v4025_v59  }
 0xbfc   : > { %3636 = vset.pattern.permute.xlu1 %v3726_v49 }
 0xc5d   : > { %v2288_v50 = vpop.permute.xlu0 %2287 }
 0xc5e   : > { %v2298_v17 = vmul.f32 %v2288_v50, %v4031_v62  ;;  %v2286_v51 = vpop.permute.xlu1 %2285 }
 0xc5f   : > { %v2297_v52 = vmul.f32 %v2286_v51, %v4025_v59 }
 0xc60   : > { %2308 = vperm.xlu1 %3636, %v2298_v17  }
 0xc61   : > { %2303 = vperm.xlu0 %3637, %v2297_v52  }
 0xc62   : > { %v2290_v53 = vpop.permute.xlu1 %2289 }
 0xc63   : > { %v2299_v57 = vmul.f32 %v2290_v53, %v4034_v1 }
 0xc65   : > { %3638 = vset.pattern.permute.xlu0 %v3724_v32 }
 0xc66   : > { %v2292_v54 = vpop.permute.xlu1 %2291  ;;  %2334 = vperm.xlu0 %3638, %v4034_v1  }
 0xc67   : > { %v2300_v56 = vmul.f32 %v2292_v54, %v4041_v6 }
 0xc69   : > { %2318 = vperm.xlu1 %3636, %v2300_v56  }
 0xc6a   : > { %3640 = vset.pattern.permute.xlu0 %v3727_v60 }
 0xc6b   : > { %2354 = vperm.xlu0 %3640, %v4025_v59  }
 0xc6d   : > { %2313 = vperm.xlu1 %3636, %v2299_v57  }
 0xc6e   : > { %v2331_v63 = vpop.permute.xlu0 %2330 }
 0xc6f   : > { %2366 = vperm.xlu0 %3640, %v4041_v6  }
 0xc71   : > { %3639 = vset.pattern.permute.xlu1 %v3724_v32 }
 0xc72   : > { %2338 = vperm.xlu1 %3639, %v4041_v6  }
 0xc73   : > { %3642 = vset.pattern.permute.xlu0 %v3719_v9 }
 0xc76   : > { %3641 = vset.pattern.permute.xlu1 %v3727_v60 }
 0xc77   : > { %2358 = vperm.xlu1 %3641, %v4031_v62   ;;  %v2327_v61 = vpop.permute.xlu1 %2326 }
 0xc7b   : > { %2362 = vperm.xlu1 %3641, %v4034_v1  }
 0xc7f   : > { %3643 = vset.pattern.permute.xlu1 %v3719_v9 }
 0xcdf   : > { %v2309_v13 = vpop.permute.xlu1 %2308 }
 0xce0   : > { %v2322_v16 = vmul.f32 %v2309_v13, %v4199_v11  ;;  %v2304_v18 = vpop.permute.xlu0 %2303 }
 0xce1   : > { %v2321_v19 = vmul.f32 %v2304_v18, %v4201_v14 }
 0xce2   : > { %v2342_v20 = vadd.f32 %v2331_v63, %v2322_v16 }
 0xce3   : > { %v2341_v59 = vadd.f32 %v2327_v61, %v2321_v19 }
 0xce4   : > { %v2346_v22 = vmax.f32 %v2342_v20, 0.0 }
 0xce5   : > { %v2345_v62 = vmax.f32 %v2341_v59, 0.0  ;;  %v2335_v26 = vpop.permute.xlu0 %2334 }
 0xce7   : > { %v3477_v2 = vpack.c.bf16 %v2346_v22, %v2345_v62 }
 0xce8   : > { %v2319_v6 = vpop.permute.xlu1 %2318 }
 0xce9   : > { %3478 = vmatprep.subr.bf16.mxu1 %v3477_v2  ;;  %v2324_v11 = vmul.f32 %v2319_v6, %v4213_v27 }
 0xcea   : > { %3480 = vmatpush3.bf16.msra.mxu1 %v3477_v2 }
 0xcec   : > { %v2314_v1 = vpop.permute.xlu1 %2313 }
 0xced   : > { %v2323_v9 = vmul.f32 %v2314_v1, %v4208_v21  ;;  %v2355_v21 = vpop.permute.xlu0 %2354 }
 0xcef   : > { %v2343_v29 = vadd.f32 %v2335_v26, %v2323_v9 }
 0xcf1   : > { %v2339_v0 = vpop.permute.xlu1 %2338  ;;  %v2347_v30 = vmax.f32 %v2343_v29, 0.0  ;;  %v2367_v42 = vpop.permute.xlu0 %2366 }
 0xcf2   : > { %v2344_v14 = vadd.f32 %v2339_v0, %v2324_v11 }
 0xcf4   : > { %v2348_v24 = vmax.f32 %v2344_v14, 0.0 }
 0xcf6   : > { %v3481_v34 = vpack.c.bf16 %v2348_v24, %v2347_v30  ;;  %v2359_v27 = vpop.permute.xlu1 %2358  ;;  %v3728_v24 = vmov 12  }
 0xcf8   : > { %3482 = vmatprep.subr.bf16.mxu1 %v3481_v34 }
 0xcf9   : > { %3484 = vmatpush3.bf16.msra.mxu1 %v3481_v34 }
 0xcfa   : > { %v2363_v40 = vpop.permute.xlu1 %2362 }
 0xcfc   : > { %3348 = vmatmul.mubr.msk.f32.vlgmr.msra.gmra.mrb[12].mxu1 %vm712_vm14, %v2350_v35 }
 0xcfd   : > { %3350 = vmatprep.mubr.msk.f32.mxu1 %vm712_vm14, %v2351_v36 }
 0xd00   : > { %3351 = vmatmul.mubr.msk.f32.gmra.mrb[14].mxu1 %vm712_vm14, %v2352_v37 }
 0xd01   : > { %3375 = vmatprep.mubr.msk.f32.mxu1 %vm712_vm14, %v4092_v55 }
 0xdcf   : > { %v3349_v28 = vpop.f32.mrb[12].mxu1 }
 0xdd0   : > { %v2453_v32 = vadd.f32 %v3349_v28, %v2359_v27  ;;  %v2447_v7 = vpop.f32.mrb[13].mxu1 }
 0xdd1   : > { %v2448_v38 = vadd.f32 %v2447_v7, %v2355_v21 }
 0xdd2   : > { %v2469_v39 = vsel %vm610_vm13, %v2453_v32, 0.0 }
 0xdd3   : > { %v3352_v10 = vpop.f32.mrb[14].mxu1  ;;  %2470 = vadd.xlane.f32.xlu0 %v2469_v39  ;;  %v2466_v44 = vsel %vm610_vm13, %v2448_v38, 0.0 }
 0xdd4   : > { %v2463_v4 = vadd.f32 %v3352_v10, %v2367_v42  ;;  %v2457_v45 = vpop.f32.mrb[15].mxu1  ;;  %2467 = vadd.xlane.f32.xlu1 %v2466_v44  ;;  %v3674_v10 = vld [vmem:[%s3833_s0] sm:$0xff] }
 0xdd5   : > { %v2458_v43 = vadd.f32 %v2457_v45, %v2363_v40  ;;  %v3730_v40 = vmov 11  }
 0xdd6   : > { %v2475_v55 = vsel %vm610_vm13, %v2463_v4, 0.0 }
 0xdd7   : > { %v2472_v12 = vsel %vm610_vm13, %v2458_v43, 0.0 }
 0xdd8   : > { %2476 = vadd.xlane.f32.xlu1 %v2475_v55  ;;  %2473 = vadd.xlane.f32.xlu0 %v2472_v12 }
 0xe60   : > { %v2471_v46 = vpop.xlane.xlu0 %2470 }
 0xe61   : > { %v2468_v41 = vpop.xlane.xlu1 %2467 }
 0xe62   : > { %v3485_v47 = vpack.c.bf16 %v2471_v46, %v2468_v41  ;;  %v3676_v41 = vld [vmem:[%s3833_s0 + $0x18] sm:$0xff] }
 0xe64   : > { %3486 = vmatprep.subr.bf16.mxu0 %v3485_v47 }
 0xe65   : > { %v2474_v15 = vpop.xlane.xlu0 %2473  ;;  %3488 = vmatpush3.bf16.msra.mxu0 %v3485_v47  ;;  %v2477_v48 = vpop.xlane.xlu1 %2476 }
 0xe66   : > { %v3489_v49 = vpack.c.bf16 %v2477_v48, %v2474_v15  ;;  %v3677_v48 = vld [vmem:[%s3833_s0 + $0x10] sm:$0xff] }
 0xe68   : > { %3490 = vmatprep.subr.bf16.mxu0 %v3489_v49 }
 0xe69   : > { %3492 = vmatpush3.bf16.msra.mxu0 %v3489_v49 }
 0xe6c   : > { %3362 = vmatmul.mubr.msk.f32.vlgmr.msra.gmra.mrb[32].mxu0 %vm712_vm14, %v4101_v3 }
 0xe6d   : > { %3364 = vmatprep.mubr.msk.f32.mxu0 %vm712_vm14, %v4106_v5 }
 0xe70   : > { %3365 = vmatmul.mubr.msk.f32.gmra.mrb[34].mxu0 %vm712_vm14, %v4115_v8 }
 0xf3f   : > { %v3363_v50 = vpop.f32.mrb[32].mxu0 }
 0xf40   : > { %v2564_v17 = vmul.f32 0.03125, %v3363_v50  ;;  %v2544_v51 = vpop.f32.mrb[33].mxu0 }
 0xf41   : > { %v2563_v52 = vmul.f32 0.03125, %v2544_v51 }
 0xf42   : > { %2574 = vperm.xlu1 %3643, %v2564_v17  }
 0xf43   : > { %2569 = vperm.xlu0 %3642, %v2563_v52   ;;  %v3366_v53 = vpop.f32.mrb[34].mxu0 }
 0xf44   : > { %v2554_v54 = vpop.f32.mrb[35].mxu0  ;;  %v2566_v57 = vmul.f32 0.03125, %v3366_v53 }
 0xf45   : > { %v2565_v56 = vmul.f32 0.03125, %v2554_v54 }
 0xf47   : > { %2579 = vperm.xlu1 %3643, %v2565_v56   ;;  %3644 = vset.pattern.permute.xlu0 %v3728_v24 }
 0xf4b   : > { %2584 = vperm.xlu1 %3643, %v2566_v57  }
 0xf4f   : > { %3645 = vset.pattern.permute.xlu1 %v3728_v24 }
 0xfc1   : > { %v2575_v58 = vpop.permute.xlu1 %2574 }
 0xfc2   : > { %v4265_v60 = vsub.f32 %v2453_v32, %v2575_v58  ;;  %v2570_v61 = vpop.permute.xlu0 %2569 }
 0xfc3   : > { %v4267_v63 = vsub.f32 %v2448_v38, %v2570_v61 }
 0xfc4   : > { %v2592_v13 = vmul.f32 %v4265_v60, %v4265_v60 }
 0xfc5   : > { %v2591_v16 = vmul.f32 %v4267_v63, %v4267_v63 }
 0xfc6   : > { %v2580_v18 = vpop.permute.xlu1 %2579  ;;  %v2598_v19 = vsel %vm610_vm13, %v2592_v13, 0.0 }
 0xfc7   : > { %v4274_v20 = vsub.f32 %v2458_v43, %v2580_v18  ;;  %2599 = vadd.xlane.f32.xlu0 %v2598_v19  ;;  %v2595_v59 = vsel %vm610_vm13, %v2591_v16, 0.0 }
 0xfc8   : > { %2596 = vadd.xlane.f32.xlu1 %v2595_v59 }
 0xfc9   : > { %v2593_v22 = vmul.f32 %v4274_v20, %v4274_v20 }
 0xfca   : > { %v2585_v62 = vpop.permute.xlu1 %2584 }
 0xfcb   : > { %v4279_v2 = vsub.f32 %v2463_v4, %v2585_v62  ;;  %v2601_v6 = vsel %vm610_vm13, %v2593_v22, 0.0  ;;  %v3675_v4 = vld [vmem:[%s3833_s0 + $0x8] sm:$0xff] }
 0xfcc   : > { %2602 = vadd.xlane.f32.xlu1 %v2601_v6 }
 0xfcd   : > { %v2594_v1 = vmul.f32 %v4279_v2, %v4279_v2 }
 0xfcf   : > { %v2604_v9 = vsel %vm610_vm13, %v2594_v1, 0.0 }
 0xfd0   : > { %2605 = vadd.xlane.f32.xlu1 %v2604_v9 }
0x1054   : > { %v2600_v26 = vpop.xlane.xlu0 %2599 }
0x1055   : > { %v2597_v11 = vpop.xlane.xlu1 %2596 }
0x1056   : > { %v3493_v29 = vpack.c.bf16 %v2600_v26, %v2597_v11 }
0x1058   : > { %3494 = vmatprep.subr.bf16.mxu1 %v3493_v29 }
0x1059   : > { %3496 = vmatpush3.bf16.msra.mxu1 %v3493_v29  ;;  %v2603_v0 = vpop.xlane.xlu1 %2602 }
0x105d   : > { %v2606_v14 = vpop.xlane.xlu1 %2605 }
0x105e   : > { %v3497_v30 = vpack.c.bf16 %v2606_v14, %v2603_v0 }
0x1060   : > { %3498 = vmatprep.subr.bf16.mxu1 %v3497_v30 }
0x1061   : > { %3500 = vmatpush3.bf16.msra.mxu1 %v3497_v30 }
0x1064   : > { %3376 = vmatmul.mubr.msk.f32.vlgmr.msra.gmra.mrb[16].mxu1 %vm712_vm14, %v4101_v3 }
0x1065   : > { %3378 = vmatprep.mubr.msk.f32.mxu1 %vm712_vm14, %v4106_v5 }
0x1068   : > { %3379 = vmatmul.mubr.msk.f32.gmra.mrb[18].mxu1 %vm712_vm14, %v4115_v8 }
0x1137   : > { %v3377_v34 = vpop.f32.mrb[16].mxu1 }
0x1138   : > { %v2693_v35 = vmul.f32 0.03125, %v3377_v34  ;;  %v2673_v36 = vpop.f32.mrb[17].mxu1 }
0x1139   : > { %v2692_v37 = vmul.f32 0.03125, %v2673_v36 }
0x113a   : > { %v2697_v21 = vadd.f32 1e-05, %v2693_v35 }
0x113b   : > { %v2696_v27 = vadd.f32 1e-05, %v2692_v37  ;;  %v3380_v28 = vpop.f32.mrb[18].mxu1 }
0x113c   : > { %3666 = vrsqrt.f32 %v2697_v21  ;;  %v2683_v32 = vpop.f32.mrb[19].mxu1  ;;  %v2695_v3 = vmul.f32 0.03125, %v3380_v28 }
0x113d   : > { %3668 = vrsqrt.f32 %v2696_v27  ;;  %v2694_v7 = vmul.f32 0.03125, %v2683_v32 }
0x113e   : > { %v2699_v38 = vadd.f32 1e-05, %v2695_v3 }
0x113f   : > { %v2698_v5 = vadd.f32 1e-05, %v2694_v7 }
0x1141   : > { %3670 = vrsqrt.f32 %v2698_v5 }
0x1142   : > { %3672 = vrsqrt.f32 %v2699_v38 }
0x1146   : > { %v3667_v8 = vpop.eup %3666 }
0x1147   : > { %v3669_v39 = vpop.eup %3668  ;;  %2710 = vrot.lane.b32.xlu0 %v3667_v8, %s3729_s10 }
0x1148   : > { %2708 = vrot.lane.b32.xlu1 %v3669_v39, %s3729_s10 }
0x114b   : > { %v3671_v42 = vpop.eup %3670  ;;  %2749 = vperm.xlu0 %3644, %v3674_v10  }
0x114c   : > { %2712 = vrot.lane.b32.xlu1 %v3671_v42, %s3729_s10  ;;  %v3673_v44 = vpop.eup %3672 }
0x114f   : > { %3646 = vset.pattern.permute.xlu0 %v3730_v40 }
0x1150   : > { %2714 = vrot.lane.b32.xlu1 %v3673_v44, %s3729_s10 }
0x1154   : > { %2753 = vperm.xlu1 %3645, %v3675_v4  }
0x1158   : > { %3647 = vset.pattern.permute.xlu1 %v3730_v40 }
0x11b9   : > { %v2711_v45 = vpop.permute.xlu0 %2710 }
0x11ba   : > { %v2721_v43 = vmul.f32 %v3675_v4, %v2711_v45  ;;  %v2709_v55 = vpop.permute.xlu1 %2708 }
0x11bb   : > { %v2720_v12 = vmul.f32 %v3674_v10, %v2709_v55 }
0x11bc   : > { %2731 = vperm.xlu0 %3646, %v2721_v43  }
0x11bd   : > { %2726 = vperm.xlu1 %3647, %v2720_v12  }
0x11be   : > { %v2713_v46 = vpop.permute.xlu1 %2712 }
0x11bf   : > { %v2722_v49 = vmul.f32 %v3677_v48, %v2713_v46 }
0x11c0   : > { %3649 = vset.pattern.permute.xlu0 %v3728_v24 }
0x11c1   : > { %2761 = vperm.xlu0 %3649, %v3676_v41  }
0x11c2   : > { %v2715_v47 = vpop.permute.xlu1 %2714 }
0x11c3   : > { %v2723_v15 = vmul.f32 %v3676_v41, %v2715_v47 }
0x11c5   : > { %2741 = vperm.xlu1 %3647, %v2723_v15  }
0x11c9   : > { %2736 = vperm.xlu1 %3647, %v2722_v49  }
0x11ca   : > { %v2750_v50 = vpop.permute.xlu0 %2749 }
0x11cd   : > { %3648 = vset.pattern.permute.xlu1 %v3728_v24 }
0x11ce   : > { %2757 = vperm.xlu1 %3648, %v3677_v48  }
0x11d3   : > { %v2754_v17 = vpop.permute.xlu1 %2753 }
0x123b   : > { %v2732_v51 = vpop.permute.xlu0 %2731 }
0x123c   : > { %v2745_v52 = vmul.f32 %v2732_v51, %v4265_v60  ;;  %v2727_v53 = vpop.permute.xlu1 %2726 }
0x123d   : > { %v2744_v54 = vmul.f32 %v2727_v53, %v4267_v63 }
0x123e   : > { %v2765_v56 = vadd.f32 %v2754_v17, %v2745_v52 }
0x123f   : > { %v2764_v57 = vadd.f32 %v2750_v50, %v2744_v54 }
0x1240   : > { %v2769_v58 = vmax.f32 %v2765_v56, 0.0  ;;  %v2762_v19 = vpop.permute.xlu0 %2761 }
0x1241   : > { %v2768_v61 = vmax.f32 %v2764_v57, 0.0 }
0x1242   : > { %v2773_v13 = vadd.f32 %v2769_v58, %v4167_v23 }
0x1243   : > { %v2772_v16 = vadd.f32 %v2768_v61, %v4169_v25 }
0x1244   : > { %2777 = vst.msk [vmem:[#allocation2 + $0x8] sm:$0xff] %vm610_vm13, %v2773_v13  ;;  %v2742_v18 = vpop.permute.xlu1 %2741  ;;  %2785 = vst.msk [vmem:[%s3838_s19 + $0x8] sm:$0xff] (!%p3010_p8), %vm610_vm13, %v2773_v13 }
0x1245   : > { %2776 = vst.msk [vmem:[#allocation2] sm:$0xff] %vm610_vm13, %v2772_v16  ;;  %v2747_v59 = vmul.f32 %v2742_v18, %v4279_v2  ;;  %2784 = vst.msk [vmem:[%s3838_s19] sm:$0xff] (!%p3010_p8), %vm610_vm13, %v2772_v16 }
0x1247   : > { %v2767_v60 = vadd.f32 %v2762_v19, %v2747_v59 }
0x1248   : > { %v2737_v22 = vpop.permute.xlu1 %2736 }
0x1249   : > { %v2771_v62 = vmax.f32 %v2767_v60, 0.0  ;;  %v2746_v6 = vmul.f32 %v2737_v22, %v4274_v20 }
0x124b   : > { %v2775_v63 = vadd.f32 %v2771_v62, %v4177_v33 }
0x124d   : > { %2779 = vst.msk [vmem:[#allocation2 + $0x18] sm:$0xff] %vm610_vm13, %v2775_v63  ;;  %v2758_v23 = vpop.permute.xlu1 %2757  ;;  %2787 = vst.msk [vmem:[%s3838_s19 + $0x18] sm:$0xff] (!%p3010_p8), %vm610_vm13, %v2775_v63 }
0x124e   : > { %v2766_v1 = vadd.f32 %v2758_v23, %v2746_v6  ;;  %2783 = sbr.rel (%p3010_p8) target bundleno = 4693 (0x1255), region = 60 }
0x1250   : > { %v2770_v25 = vmax.f32 %v2766_v1, 0.0 }
0x1252   : > { %v2774_v9 = vadd.f32 %v2770_v25, %v4175_v31 }
0x1254   : > { %2778 = vst.msk [vmem:[#allocation2 + $0x10] sm:$0xff] %vm610_vm13, %v2774_v9  ;;  %2786 = vst.msk [vmem:[%s3838_s19 + $0x10] sm:$0xff] (!%p3010_p8), %vm610_vm13, %v2774_v9 }
0x1255 PF: > { %s18_s9 = sadd.s32 1, %s3716_s9   ;;  %s4344_s0 = sld [smem:[#allocation5_spill]] }
0x1256   : > { %p15_p9 = scmp.ge.s32.totalorder %s18_s9, 14   ;;  %s4345_s18 = sld [smem:[#allocation6_spill]] }
0x1257   : > { %s4346_s27 = smov %s3708_s29  ;;  %s4347_s28 = smov %s3712_s30 }
0x1258   :  { %17 = sbr.rel (!%p15_p9) target bundleno = 3 (0x3), region = 117 }
0x125b   : > { %s4348_s29 = smov %s4344_s0 }
0x125c   : > { %s4349_s30 = smov %s4345_s18 }

</bundles_post_ra>
